<compile_context>
chip_gen: v7x
topology: tpu7x:2x2x1
jax: 0.10.0
libtpu: 0.0.40
codegen_flags: <defaults>
</compile_context>

<pallas_src>
import functools
import math

import numpy as np
import jax
import jax.numpy as jnp
from jax import lax
from jax.experimental import pallas as pl
from jax.experimental.pallas import tpu as pltpu

NEG_SLOPE = 0.01  # nn.LeakyReLU default
BN_EPS = 1e-5


def _lrelu(x):
    return jnp.where(x >= 0, x, NEG_SLOPE * x)


# --------------------------------------------------------------------------
# Kernel 1: fused conv1 -> lrelu -> pool -> conv2 -> lrelu -> pool
#           (batch-blocked: B_TILE samples' rows stacked on the sublane axis)
# --------------------------------------------------------------------------
def _conv_stack_kernel(x_ref, g1_ref, b1_ref, r1_ref, g2_ref, b2_ref, r2_ref,
                       feat_ref, p1_ref, *, kh):
    def conv_pool(a_ref, g_ref, b_ref, r_ref):
        # a_ref: (bt*h_in, w_in*c_in)  batch-stacked activation rows (ref)
        # g_ref: (2, kh, w_in*c_in, nw2*c_out)  even/odd banded conv matrices
        # b_ref: (1, nw2*c_out)         per-channel bias tiled over w2
        # r_ref: (2, bt*h2, L)          0/1 per-sample row selectors; rows that
        #                               would mix two samples are never selected.
        rows = a_ref.shape[0]
        L = rows - (kh - 1)
        halves = []
        for par in range(2):                      # even / odd output columns
            acc = None
            for dy in range(kh):                  # static ref slices, no relayout
                t = jnp.dot(a_ref[dy:dy + L, :], g_ref[par, dy],
                            preferred_element_type=jnp.float32)
                acc = t if acc is None else acc + t
            halves.append(acc)
        # 2x2 max-pool along W (bias + LeakyReLU commute with max -> exact).
        m = _lrelu(jnp.maximum(halves[0], halves[1]) + b_ref[...])
        # 2x2 max-pool along H (and per-sample row extraction) via 0/1 matmuls.
        he = jnp.dot(r_ref[0], m, preferred_element_type=jnp.float32)
        ho = jnp.dot(r_ref[1], m, preferred_element_type=jnp.float32)
        return jnp.maximum(he, ho)

    p1_ref[...] = conv_pool(x_ref, g1_ref, b1_ref, r1_ref)   # (bt*7, 224)
    p2 = conv_pool(p1_ref, g2_ref, b2_ref, r2_ref)           # (bt*2, 128)
    feat_ref[...] = p2.astype(feat_ref.dtype)                 # bf16 features


# --------------------------------------------------------------------------
# Kernel 2: K-tiled bf16 fc1 + fused head (LeakyReLU, BN eval, Dropout eval, fc2)
# --------------------------------------------------------------------------
def _fc_head_kernel(feat_ref, w1_ref, b1_ref, gamma_ref, beta_ref, mean_ref,
                    var_ref, w2_ref, b2_ref, o_ref, acc_ref):
    k = pl.program_id(0)

    @pl.when(k == 0)
    def _():
        acc_ref[...] = jnp.zeros_like(acc_ref)

    # bf16 x bf16 -> f32 accumulation: native MXU path, halves weight HBM bytes.
    acc_ref[...] += jnp.dot(feat_ref[...], w1_ref[...],
                            preferred_element_type=jnp.float32)

    @pl.when(k == pl.num_programs(0) - 1)
    def _():
        h = _lrelu(acc_ref[...] + b1_ref[...])
        inv_std = lax.rsqrt(var_ref[...] + BN_EPS)
        y = (h - mean_ref[...]) * inv_std * gamma_ref[...] + beta_ref[...]
        # Dropout(p=0.15) in eval mode is the identity.
        out = jnp.dot(y, w2_ref[...], preferred_element_type=jnp.float32)
        o_ref[...] = (out + b2_ref[...]).astype(o_ref.dtype)   # lane-dense (n,128)


# --------------------------------------------------------------------------
# Wrapper-side one-time weight preparation (layout plumbing, not compute)
# --------------------------------------------------------------------------
def _band_matrices(w4, w_in, out_ws):
    """Banded-matmul form of a valid conv, one matrix per kernel row dy.

    Row index  = w*in_c + ci   (input lanes, channels fastest)
    Col index  = j*out_c + co  (output lanes for output columns out_ws[j])
    Entry      = W[co, ci, dy, dx]  where out_ws[j] + dx == w.
    Returns (kh, w_in*in_c, len(out_ws)*out_c).
    """
    out_c, in_c, kh, kw = w4.shape
    sel = np.zeros((kw, w_in, len(out_ws)), np.float32)
    for dx in range(kw):
        for j, w in enumerate(out_ws):
            sel[dx, w + dx, j] = 1.0
    sel = jnp.asarray(sel)
    mats = []
    for dy in range(kh):
        g = jnp.einsum("xpj,oix->pijo", sel, w4[:, :, dy, :])
        mats.append(g.reshape(w_in * in_c, len(out_ws) * out_c))
    return jnp.stack(mats)


def _row_selectors(bt, h_in, kh=3):
    """(2, bt*h2, bt*h_in-(kh-1)) 0/1 matrices selecting even/odd conv-output
    rows per sample from the batch-stacked conv output (floor 2x2 H-pool)."""
    oh = h_in - (kh - 1)
    h2 = oh // 2
    L = bt * h_in - (kh - 1)
    r = np.zeros((2, bt * h2, L), np.float32)
    for par in range(2):
        for b in range(bt):
            for j in range(h2):
                r[par, b * h2 + j, b * h_in + 2 * j + par] = 1.0
    return jnp.asarray(r)


def prepare_kernel_params(params, h, w, bt):
    c1_out, c1_in = params["conv1_w"].shape[:2]        # 32, 2
    c2_out = params["conv2_w"].shape[0]                # 64
    oh1 = h - 2                                        # 14
    ph1, pw1 = oh1 // 2, (w - 2) // 2                  # 7, 7
    oh2 = ph1 - 2                                      # 5
    ph2, pw2 = oh2 // 2, (pw1 - 2) // 2                # 2, 2
    flat = c2_out * ph2 * pw2                          # 256

    even1 = list(range(0, 2 * pw1, 2))
    odd1 = [i + 1 for i in even1]
    even2 = list(range(0, 2 * pw2, 2))
    odd2 = [i + 1 for i in even2]

    g1 = jnp.stack([_band_matrices(params["conv1_w"], w, even1),
                    _band_matrices(params["conv1_w"], w, odd1)])
    g2 = jnp.stack([_band_matrices(params["conv2_w"], pw1, even2),
                    _band_matrices(params["conv2_w"], pw1, odd2)])

    # fc1 weight rows permuted from PyTorch's NCHW flatten order (c, h, w) to
    # this kernel's channels-last feature order (h, w, c); streamed in bf16.
    w1p = params["fc1_w"].reshape(c2_out, ph2, pw2, -1)
    w1p = w1p.transpose(1, 2, 0, 3).reshape(flat, -1).astype(jnp.bfloat16)

    # Head padded to lane width 128 -> lane-dense epilogue matmul + stores.
    n_cls = params["fc2_w"].shape[1]
    w2p = jnp.zeros((params["fc2_w"].shape[0], 128), jnp.float32)
    w2p = w2p.at[:, :n_cls].set(params["fc2_w"])
    b2p = jnp.zeros((1, 128), jnp.float32).at[0, :n_cls].set(params["fc2_b"])

    return {
        "g1": g1,                                             # (2,3, W*Cin, pw1*32)
        "b1": jnp.tile(params["conv1_b"], pw1)[None, :],      # (1, pw1*32)
        "r1": _row_selectors(bt, h),                          # (2, bt*7, bt*16-2)
        "g2": g2,                                             # (2,3, pw1*32, pw2*64)
        "b2": jnp.tile(params["conv2_b"], pw2)[None, :],      # (1, pw2*64)
        "r2": _row_selectors(bt, ph1),                        # (2, bt*2, bt*7-2)
        "w1": w1p,                                            # (flat, 128) bf16
        "b1_fc": params["fc1_b"][None, :],
        "gamma": params["bn_gamma"][None, :],
        "beta": params["bn_beta"][None, :],
        "mean": params["bn_mean"][None, :],
        "var": params["bn_var"][None, :],
        "w2": w2p,                                            # (128, 128) padded
        "b2_fc": b2p,                                         # (1, 128) padded
        "n_classes": n_cls,
        "in_shape": (h, w, c1_in),
        "dims": (ph1, pw1 * c1_out, ph2, pw2 * c2_out),
        "flat": flat,
        "bt": bt,
    }


def _pick_block_k(flat, cap=28672):
    """Largest K tile that divides flat, is a multiple of 128, and is <= cap.
    (At flat=194432 this picks 27776; bf16 tile ~6.8 MiB, x2 buffers ~13.6 MiB.)"""
    if flat <= cap or flat % 128 != 0:
        return flat
    best = 128
    for d in range(128, cap + 1, 128):
        if flat % d == 0:
            best = d
    return best


# --------------------------------------------------------------------------
# Forward pass (2 pallas_calls)
# --------------------------------------------------------------------------
def cnn_model_2d_forward(x, kp):
    n = x.shape[0]
    h, w, c_in = kp["in_shape"]
    ph1, lane1, ph2, lane2 = kp["dims"]
    flat, bt = kp["flat"], kp["bt"]

    # Pad batch to a multiple of the batch tile, go channels-last, and stack
    # sample rows on the sublane axis: (N_pad*H, W*C), channels fastest on lanes.
    n_pad = -(-n // bt) * bt
    x_nhwc = x.transpose(0, 2, 3, 1)
    if n_pad != n:
        x_nhwc = jnp.pad(x_nhwc, ((0, n_pad - n), (0, 0), (0, 0), (0, 0)))
    x2d = x_nhwc.reshape(n_pad * h, w * c_in)

    const = dict(pipeline_mode=pl.Buffered(1))   # grid-invariant: single buffer

    feat2d = pl.pallas_call(
        functools.partial(_conv_stack_kernel, kh=3),
        out_shape=jax.ShapeDtypeStruct((n_pad * ph2, lane2), jnp.bfloat16),
        grid=(n_pad // bt,),
        in_specs=[
            pl.BlockSpec((bt * h, w * c_in), lambda i: (i, 0)),
            pl.BlockSpec(kp["g1"].shape, lambda i: (0, 0, 0, 0), **const),
            pl.BlockSpec(kp["b1"].shape, lambda i: (0, 0), **const),
            pl.BlockSpec(kp["r1"].shape, lambda i: (0, 0, 0), **const),
            pl.BlockSpec(kp["g2"].shape, lambda i: (0, 0, 0, 0), **const),
            pl.BlockSpec(kp["b2"].shape, lambda i: (0, 0), **const),
            pl.BlockSpec(kp["r2"].shape, lambda i: (0, 0, 0), **const),
        ],
        out_specs=pl.BlockSpec((bt * ph2, lane2), lambda i: (i, 0)),
        scratch_shapes=[pltpu.VMEM((bt * ph1, lane1), jnp.float32)],
        compiler_params=pltpu.CompilerParams(
            dimension_semantics=("parallel",)),
    )(x2d, kp["g1"], kp["b1"], kp["r1"], kp["g2"], kp["b2"], kp["r2"])

    # Rows are (sample, pooled-h); lanes are (pooled-w, c) -> per-sample (h,w,c).
    feat = feat2d.reshape(n_pad, flat)[:n]

    tk = _pick_block_k(flat)
    assert flat % tk == 0
    nh = kp["w1"].shape[1]                               # 128 hidden units
    n_out_pad = kp["w2"].shape[1]                        # 128 (padded head)
    out = pl.pallas_call(
        _fc_head_kernel,
        out_shape=jax.ShapeDtypeStruct((n, n_out_pad), jnp.float32),
        grid=(flat // tk,),
        in_specs=[
            pl.BlockSpec((n, tk), lambda k: (0, k)),
            pl.BlockSpec((tk, nh), lambda k: (k, 0)),
            pl.BlockSpec(kp["b1_fc"].shape, lambda k: (0, 0), **const),
            pl.BlockSpec(kp["gamma"].shape, lambda k: (0, 0), **const),
            pl.BlockSpec(kp["beta"].shape, lambda k: (0, 0), **const),
            pl.BlockSpec(kp["mean"].shape, lambda k: (0, 0), **const),
            pl.BlockSpec(kp["var"].shape, lambda k: (0, 0), **const),
            pl.BlockSpec(kp["w2"].shape, lambda k: (0, 0), **const),
            pl.BlockSpec(kp["b2_fc"].shape, lambda k: (0, 0), **const),
        ],
        out_specs=pl.BlockSpec((n, n_out_pad), lambda k: (0, 0)),
        scratch_shapes=[pltpu.VMEM((n, nh), jnp.float32)],
        compiler_params=pltpu.CompilerParams(
            dimension_semantics=("arbitrary",),
            # Generation-safe budget: bf16 27776-wide K tiles double-buffer in
            # ~13.6 MiB, fitting v5e/v6e/v7x scoped VMEM (v7x has only 64 MiB
            # physical, so no 128-MiB-era resident-weight assumption is made).
            vmem_limit_bytes=32 * 1024 * 1024),
    )(feat, kp["w1"], kp["b1_fc"], kp["gamma"], kp["beta"], kp["mean"],
      kp["var"], kp["w2"], kp["b2_fc"])
    return out[:, :kp["n_classes"]]


# --------------------------------------------------------------------------
# Pure-JAX reference (exactly mirrors PyTorch eval-mode forward, f32)
# --------------------------------------------------------------------------
def reference_forward(x, params):
    def conv_block(y, w4, b):
        y = lax.conv_general_dilated(
            y, w4, (1, 1), "VALID",
            dimension_numbers=("NCHW", "OIHW", "NCHW"))
        y = _lrelu(y + b.reshape(1, -1, 1, 1))
        y = lax.reduce_window(y, -jnp.inf, lax.max,
                              (1, 1, 2, 2), (1, 1, 2, 2), "VALID")
        return y

    out = conv_block(x, params["conv1_w"], params["conv1_b"])
    out = conv_block(out, params["conv2_w"], params["conv2_b"])
    out = out.reshape(out.shape[0], -1)               # NCHW flatten == torch .view
    out = _lrelu(out @ params["fc1_w"] + params["fc1_b"])
    out = (out - params["bn_mean"]) / jnp.sqrt(params["bn_var"] + BN_EPS)
    out = out * params["bn_gamma"] + params["bn_beta"]
    out = out @ params["fc2_w"] + params["fc2_b"]
    return out


# --------------------------------------------------------------------------
# Deterministic parameter init (PyTorch-style uniform, torch layouts)
# --------------------------------------------------------------------------
def init_params(key, flat_dim):
    ks = jax.random.split(key, 12)

    def u(k, shape, fan_in):
        bound = 1.0 / math.sqrt(fan_in)
        return jax.random.uniform(k, shape, jnp.float32, -bound, bound)

    return {
        "conv1_w": u(ks[0], (32, 2, 3, 3), 2 * 9),
        "conv1_b": u(ks[1], (32,), 2 * 9),
        "conv2_w": u(ks[2], (64, 32, 3, 3), 32 * 9),
        "conv2_b": u(ks[3], (64,), 32 * 9),
        "fc1_w": u(ks[4], (flat_dim, 128), flat_dim),   # stored (in, out)
        "fc1_b": u(ks[5], (128,), flat_dim),
        "fc2_w": u(ks[6], (128, 2), 128),               # stored (in, out)
        "fc2_b": u(ks[7], (2,), 128),
        # Non-trivial eval-mode BN stats so the BN path is genuinely tested.
        "bn_gamma": jax.random.uniform(ks[8], (128,), jnp.float32, 0.5, 1.5),
        "bn_beta": jax.random.uniform(ks[9], (128,), jnp.float32, -0.2, 0.2),
        "bn_mean": jax.random.uniform(ks[10], (128,), jnp.float32, -0.2, 0.2),
        "bn_var": jax.random.uniform(ks[11], (128,), jnp.float32, 0.5, 1.5),
    }


if __name__ == "__main__":
    key = jax.random.PRNGKey(0)
    k_x, k_p = jax.random.split(key)

    # batch=2, in_channels=2, 16x16:  16 -> 14 -> 7 -> 5 -> 2  => flat = 64*2*2
    x = jax.random.normal(k_x, (2, 2, 16, 16), jnp.float32)
    flat_dim = 64 * 2 * 2
    params = init_params(k_p, flat_dim)

    n = x.shape[0]
    bt = n if n < 8 else 8                      # kernel-1 batch tile
    kparams = prepare_kernel_params(params, 16, 16, bt)

    out = cnn_model_2d_forward(x, kparams)
    out = jax.block_until_ready(out)
    assert out.shape == (2, 2), out.shape

    ref = reference_forward(x, params)
    # fc1 weight/activations are streamed in bf16 (f32 accumulation) per the
    # perf review; tolerance reflects that deliberate precision trade.
    if not jnp.allclose(out, ref, rtol=5e-3, atol=5e-3):
        err = float(jnp.max(jnp.abs(out - ref)))
        raise AssertionError(f"Pallas output does not match reference (max abs err {err})")

    print("KERNEL_OK")
</pallas_src>

<mosaic_0001>
module attributes {stable_mosaic.version = 11 : i64} {
  func.func @_conv_stack_kernel(%arg0: i32, %arg1: memref<32x32xf32, #tpu.memory_space<vmem>>, %arg2: memref<2x3x32x224xf32, #tpu.memory_space<vmem>>, %arg3: memref<1x224xf32, #tpu.memory_space<vmem>>, %arg4: memref<2x14x30xf32, #tpu.memory_space<vmem>>, %arg5: memref<2x3x224x128xf32, #tpu.memory_space<vmem>>, %arg6: memref<1x128xf32, #tpu.memory_space<vmem>>, %arg7: memref<2x4x12xf32, #tpu.memory_space<vmem>>, %arg8: memref<4x128xbf16, #tpu.memory_space<vmem>>, %arg9: memref<14x224xf32, #tpu.memory_space<vmem>>) attributes {dimension_semantics = [#tpu.dimension_semantics<parallel>], iteration_bounds = array<i64: 1>, scalar_prefetch = 0 : i64, scratch_operands = 1 : i64, tpu.core_type = #tpu.core_type<tc>, window_params = [{transform_indices = @transform_0, window_bounds = array<i64: 32, 32>}, {pipeline_mode = #tpu.pipeline_mode<synchronous>, transform_indices = @transform_1, window_bounds = array<i64: 2, 3, 32, 224>}, {pipeline_mode = #tpu.pipeline_mode<synchronous>, transform_indices = @transform_2, window_bounds = array<i64: 1, 224>}, {pipeline_mode = #tpu.pipeline_mode<synchronous>, transform_indices = @transform_3, window_bounds = array<i64: 2, 14, 30>}, {pipeline_mode = #tpu.pipeline_mode<synchronous>, transform_indices = @transform_4, window_bounds = array<i64: 2, 3, 224, 128>}, {pipeline_mode = #tpu.pipeline_mode<synchronous>, transform_indices = @transform_5, window_bounds = array<i64: 1, 128>}, {pipeline_mode = #tpu.pipeline_mode<synchronous>, transform_indices = @transform_6, window_bounds = array<i64: 2, 4, 12>}, {transform_indices = @transform_7, window_bounds = array<i64: 4, 128>}]} {
    %c0 = arith.constant 0 : index
    %c0_0 = arith.constant 0 : index
    %0 = vector.load %arg1[%c0, %c0_0] : memref<32x32xf32, #tpu.memory_space<vmem>>, vector<30x32xf32>
    %c0_1 = arith.constant 0 : index
    %c0_2 = arith.constant 0 : index
    %c0_3 = arith.constant 0 : index
    %c0_4 = arith.constant 0 : index
    %1 = vector.load %arg2[%c0_1, %c0_2, %c0_3, %c0_4] : memref<2x3x32x224xf32, #tpu.memory_space<vmem>>, vector<1x1x32x224xf32>
    %2 = vector.shape_cast %1 : vector<1x1x32x224xf32> to vector<32x224xf32>
    %cst = arith.constant dense<0.000000e+00> : vector<30x224xf32>
    %3 = tpu.matmul %0, %2, %cst {dimension_numbers = #tpu.dot_dimension_numbers<[1], [0], [0], [1], [0, 0, 1, 1], [], []>} : vector<30x32xf32>, vector<32x224xf32>, vector<30x224xf32> -> vector<30x224xf32>
    %c1 = arith.constant 1 : index
    %c0_5 = arith.constant 0 : index
    %4 = vector.load %arg1[%c1, %c0_5] : memref<32x32xf32, #tpu.memory_space<vmem>>, vector<30x32xf32>
    %c0_6 = arith.constant 0 : index
    %c1_7 = arith.constant 1 : index
    %c0_8 = arith.constant 0 : index
    %c0_9 = arith.constant 0 : index
    %5 = vector.load %arg2[%c0_6, %c1_7, %c0_8, %c0_9] : memref<2x3x32x224xf32, #tpu.memory_space<vmem>>, vector<1x1x32x224xf32>
    %6 = vector.shape_cast %5 : vector<1x1x32x224xf32> to vector<32x224xf32>
    %cst_10 = arith.constant dense<0.000000e+00> : vector<30x224xf32>
    %7 = tpu.matmul %4, %6, %cst_10 {dimension_numbers = #tpu.dot_dimension_numbers<[1], [0], [0], [1], [0, 0, 1, 1], [], []>} : vector<30x32xf32>, vector<32x224xf32>, vector<30x224xf32> -> vector<30x224xf32>
    %8 = arith.addf %3, %7 : vector<30x224xf32>
    %c2 = arith.constant 2 : index
    %c0_11 = arith.constant 0 : index
    %9 = vector.load %arg1[%c2, %c0_11] : memref<32x32xf32, #tpu.memory_space<vmem>>, vector<30x32xf32>
    %c0_12 = arith.constant 0 : index
    %c2_13 = arith.constant 2 : index
    %c0_14 = arith.constant 0 : index
    %c0_15 = arith.constant 0 : index
    %10 = vector.load %arg2[%c0_12, %c2_13, %c0_14, %c0_15] : memref<2x3x32x224xf32, #tpu.memory_space<vmem>>, vector<1x1x32x224xf32>
    %11 = vector.shape_cast %10 : vector<1x1x32x224xf32> to vector<32x224xf32>
    %cst_16 = arith.constant dense<0.000000e+00> : vector<30x224xf32>
    %12 = tpu.matmul %9, %11, %cst_16 {dimension_numbers = #tpu.dot_dimension_numbers<[1], [0], [0], [1], [0, 0, 1, 1], [], []>} : vector<30x32xf32>, vector<32x224xf32>, vector<30x224xf32> -> vector<30x224xf32>
    %13 = arith.addf %8, %12 : vector<30x224xf32>
    %c0_17 = arith.constant 0 : index
    %c0_18 = arith.constant 0 : index
    %14 = vector.load %arg1[%c0_17, %c0_18] : memref<32x32xf32, #tpu.memory_space<vmem>>, vector<30x32xf32>
    %c1_19 = arith.constant 1 : index
    %c0_20 = arith.constant 0 : index
    %c0_21 = arith.constant 0 : index
    %c0_22 = arith.constant 0 : index
    %15 = vector.load %arg2[%c1_19, %c0_20, %c0_21, %c0_22] : memref<2x3x32x224xf32, #tpu.memory_space<vmem>>, vector<1x1x32x224xf32>
    %16 = vector.shape_cast %15 : vector<1x1x32x224xf32> to vector<32x224xf32>
    %cst_23 = arith.constant dense<0.000000e+00> : vector<30x224xf32>
    %17 = tpu.matmul %14, %16, %cst_23 {dimension_numbers = #tpu.dot_dimension_numbers<[1], [0], [0], [1], [0, 0, 1, 1], [], []>} : vector<30x32xf32>, vector<32x224xf32>, vector<30x224xf32> -> vector<30x224xf32>
    %c1_24 = arith.constant 1 : index
    %c0_25 = arith.constant 0 : index
    %18 = vector.load %arg1[%c1_24, %c0_25] : memref<32x32xf32, #tpu.memory_space<vmem>>, vector<30x32xf32>
    %c1_26 = arith.constant 1 : index
    %c1_27 = arith.constant 1 : index
    %c0_28 = arith.constant 0 : index
    %c0_29 = arith.constant 0 : index
    %19 = vector.load %arg2[%c1_26, %c1_27, %c0_28, %c0_29] : memref<2x3x32x224xf32, #tpu.memory_space<vmem>>, vector<1x1x32x224xf32>
    %20 = vector.shape_cast %19 : vector<1x1x32x224xf32> to vector<32x224xf32>
    %cst_30 = arith.constant dense<0.000000e+00> : vector<30x224xf32>
    %21 = tpu.matmul %18, %20, %cst_30 {dimension_numbers = #tpu.dot_dimension_numbers<[1], [0], [0], [1], [0, 0, 1, 1], [], []>} : vector<30x32xf32>, vector<32x224xf32>, vector<30x224xf32> -> vector<30x224xf32>
    %22 = arith.addf %17, %21 : vector<30x224xf32>
    %c2_31 = arith.constant 2 : index
    %c0_32 = arith.constant 0 : index
    %23 = vector.load %arg1[%c2_31, %c0_32] : memref<32x32xf32, #tpu.memory_space<vmem>>, vector<30x32xf32>
    %c1_33 = arith.constant 1 : index
    %c2_34 = arith.constant 2 : index
    %c0_35 = arith.constant 0 : index
    %c0_36 = arith.constant 0 : index
    %24 = vector.load %arg2[%c1_33, %c2_34, %c0_35, %c0_36] : memref<2x3x32x224xf32, #tpu.memory_space<vmem>>, vector<1x1x32x224xf32>
    %25 = vector.shape_cast %24 : vector<1x1x32x224xf32> to vector<32x224xf32>
    %cst_37 = arith.constant dense<0.000000e+00> : vector<30x224xf32>
    %26 = tpu.matmul %23, %25, %cst_37 {dimension_numbers = #tpu.dot_dimension_numbers<[1], [0], [0], [1], [0, 0, 1, 1], [], []>} : vector<30x32xf32>, vector<32x224xf32>, vector<30x224xf32> -> vector<30x224xf32>
    %27 = arith.addf %22, %26 : vector<30x224xf32>
    %28 = arith.maximumf %13, %27 : vector<30x224xf32>
    %c0_38 = arith.constant 0 : index
    %c0_39 = arith.constant 0 : index
    %29 = vector.load %arg3[%c0_38, %c0_39] : memref<1x224xf32, #tpu.memory_space<vmem>>, vector<1x224xf32>
    %30 = vector.broadcast %29 : vector<1x224xf32> to vector<30x224xf32>
    %31 = arith.addf %28, %30 : vector<30x224xf32>
    %cst_40 = arith.constant 0.000000e+00 : f32
    %32 = vector.broadcast %cst_40 : f32 to vector<30x224xf32>
    %33 = arith.cmpf oge, %31, %32 : vector<30x224xf32>
    %cst_41 = arith.constant 0.00999999977 : f32
    %34 = vector.broadcast %cst_41 : f32 to vector<30x224xf32>
    %35 = arith.mulf %34, %31 : vector<30x224xf32>
    %36 = arith.select %33, %31, %35 : vector<30x224xi1>, vector<30x224xf32>
    %c0_42 = arith.constant 0 : index
    %c0_43 = arith.constant 0 : index
    %c0_44 = arith.constant 0 : index
    %37 = vector.load %arg4[%c0_42, %c0_43, %c0_44] : memref<2x14x30xf32, #tpu.memory_space<vmem>>, vector<1x14x30xf32>
    %38 = vector.shape_cast %37 : vector<1x14x30xf32> to vector<14x30xf32>
    %cst_45 = arith.constant dense<0.000000e+00> : vector<14x224xf32>
    %39 = tpu.matmul %38, %36, %cst_45 {dimension_numbers = #tpu.dot_dimension_numbers<[1], [0], [0], [1], [0, 0, 1, 1], [], []>} : vector<14x30xf32>, vector<30x224xf32>, vector<14x224xf32> -> vector<14x224xf32>
    %c1_46 = arith.constant 1 : index
    %c0_47 = arith.constant 0 : index
    %c0_48 = arith.constant 0 : index
    %40 = vector.load %arg4[%c1_46, %c0_47, %c0_48] : memref<2x14x30xf32, #tpu.memory_space<vmem>>, vector<1x14x30xf32>
    %41 = vector.shape_cast %40 : vector<1x14x30xf32> to vector<14x30xf32>
    %cst_49 = arith.constant dense<0.000000e+00> : vector<14x224xf32>
    %42 = tpu.matmul %41, %36, %cst_49 {dimension_numbers = #tpu.dot_dimension_numbers<[1], [0], [0], [1], [0, 0, 1, 1], [], []>} : vector<14x30xf32>, vector<30x224xf32>, vector<14x224xf32> -> vector<14x224xf32>
    %43 = arith.maximumf %39, %42 : vector<14x224xf32>
    %c0_50 = arith.constant 0 : index
    %c0_51 = arith.constant 0 : index
    %44 = vector.load %arg9[%c0_50, %c0_51] : memref<14x224xf32, #tpu.memory_space<vmem>>, vector<14x224xf32>
    tpu.vector_store %arg9[%c0_50, %c0_51], %43 {strides = array<i32>} : memref<14x224xf32, #tpu.memory_space<vmem>>, vector<14x224xf32>,
    %c0_52 = arith.constant 0 : index
    %c0_53 = arith.constant 0 : index
    %45 = vector.load %arg9[%c0_52, %c0_53] : memref<14x224xf32, #tpu.memory_space<vmem>>, vector<12x224xf32>
    %c0_54 = arith.constant 0 : index
    %c0_55 = arith.constant 0 : index
    %c0_56 = arith.constant 0 : index
    %c0_57 = arith.constant 0 : index
    %46 = vector.load %arg5[%c0_54, %c0_55, %c0_56, %c0_57] : memref<2x3x224x128xf32, #tpu.memory_space<vmem>>, vector<1x1x224x128xf32>
    %47 = vector.shape_cast %46 : vector<1x1x224x128xf32> to vector<224x128xf32>
    %cst_58 = arith.constant dense<0.000000e+00> : vector<12x128xf32>
    %48 = tpu.matmul %45, %47, %cst_58 {dimension_numbers = #tpu.dot_dimension_numbers<[1], [0], [0], [1], [0, 0, 1, 1], [], []>} : vector<12x224xf32>, vector<224x128xf32>, vector<12x128xf32> -> vector<12x128xf32>
    %c1_59 = arith.constant 1 : index
    %c0_60 = arith.constant 0 : index
    %49 = vector.load %arg9[%c1_59, %c0_60] : memref<14x224xf32, #tpu.memory_space<vmem>>, vector<12x224xf32>
    %c0_61 = arith.constant 0 : index
    %c1_62 = arith.constant 1 : index
    %c0_63 = arith.constant 0 : index
    %c0_64 = arith.constant 0 : index
    %50 = vector.load %arg5[%c0_61, %c1_62, %c0_63, %c0_64] : memref<2x3x224x128xf32, #tpu.memory_space<vmem>>, vector<1x1x224x128xf32>
    %51 = vector.shape_cast %50 : vector<1x1x224x128xf32> to vector<224x128xf32>
    %cst_65 = arith.constant dense<0.000000e+00> : vector<12x128xf32>
    %52 = tpu.matmul %49, %51, %cst_65 {dimension_numbers = #tpu.dot_dimension_numbers<[1], [0], [0], [1], [0, 0, 1, 1], [], []>} : vector<12x224xf32>, vector<224x128xf32>, vector<12x128xf32> -> vector<12x128xf32>
    %53 = arith.addf %48, %52 : vector<12x128xf32>
    %c2_66 = arith.constant 2 : index
    %c0_67 = arith.constant 0 : index
    %54 = vector.load %arg9[%c2_66, %c0_67] : memref<14x224xf32, #tpu.memory_space<vmem>>, vector<12x224xf32>
    %c0_68 = arith.constant 0 : index
    %c2_69 = arith.constant 2 : index
    %c0_70 = arith.constant 0 : index
    %c0_71 = arith.constant 0 : index
    %55 = vector.load %arg5[%c0_68, %c2_69, %c0_70, %c0_71] : memref<2x3x224x128xf32, #tpu.memory_space<vmem>>, vector<1x1x224x128xf32>
    %56 = vector.shape_cast %55 : vector<1x1x224x128xf32> to vector<224x128xf32>
    %cst_72 = arith.constant dense<0.000000e+00> : vector<12x128xf32>
    %57 = tpu.matmul %54, %56, %cst_72 {dimension_numbers = #tpu.dot_dimension_numbers<[1], [0], [0], [1], [0, 0, 1, 1], [], []>} : vector<12x224xf32>, vector<224x128xf32>, vector<12x128xf32> -> vector<12x128xf32>
    %58 = arith.addf %53, %57 : vector<12x128xf32>
    %c0_73 = arith.constant 0 : index
    %c0_74 = arith.constant 0 : index
    %59 = vector.load %arg9[%c0_73, %c0_74] : memref<14x224xf32, #tpu.memory_space<vmem>>, vector<12x224xf32>
    %c1_75 = arith.constant 1 : index
    %c0_76 = arith.constant 0 : index
    %c0_77 = arith.constant 0 : index
    %c0_78 = arith.constant 0 : index
    %60 = vector.load %arg5[%c1_75, %c0_76, %c0_77, %c0_78] : memref<2x3x224x128xf32, #tpu.memory_space<vmem>>, vector<1x1x224x128xf32>
    %61 = vector.shape_cast %60 : vector<1x1x224x128xf32> to vector<224x128xf32>
    %cst_79 = arith.constant dense<0.000000e+00> : vector<12x128xf32>
    %62 = tpu.matmul %59, %61, %cst_79 {dimension_numbers = #tpu.dot_dimension_numbers<[1], [0], [0], [1], [0, 0, 1, 1], [], []>} : vector<12x224xf32>, vector<224x128xf32>, vector<12x128xf32> -> vector<12x128xf32>
    %c1_80 = arith.constant 1 : index
    %c0_81 = arith.constant 0 : index
    %63 = vector.load %arg9[%c1_80, %c0_81] : memref<14x224xf32, #tpu.memory_space<vmem>>, vector<12x224xf32>
    %c1_82 = arith.constant 1 : index
    %c1_83 = arith.constant 1 : index
    %c0_84 = arith.constant 0 : index
    %c0_85 = arith.constant 0 : index
    %64 = vector.load %arg5[%c1_82, %c1_83, %c0_84, %c0_85] : memref<2x3x224x128xf32, #tpu.memory_space<vmem>>, vector<1x1x224x128xf32>
    %65 = vector.shape_cast %64 : vector<1x1x224x128xf32> to vector<224x128xf32>
    %cst_86 = arith.constant dense<0.000000e+00> : vector<12x128xf32>
    %66 = tpu.matmul %63, %65, %cst_86 {dimension_numbers = #tpu.dot_dimension_numbers<[1], [0], [0], [1], [0, 0, 1, 1], [], []>} : vector<12x224xf32>, vector<224x128xf32>, vector<12x128xf32> -> vector<12x128xf32>
    %67 = arith.addf %62, %66 : vector<12x128xf32>
    %c2_87 = arith.constant 2 : index
    %c0_88 = arith.constant 0 : index
    %68 = vector.load %arg9[%c2_87, %c0_88] : memref<14x224xf32, #tpu.memory_space<vmem>>, vector<12x224xf32>
    %c1_89 = arith.constant 1 : index
    %c2_90 = arith.constant 2 : index
    %c0_91 = arith.constant 0 : index
    %c0_92 = arith.constant 0 : index
    %69 = vector.load %arg5[%c1_89, %c2_90, %c0_91, %c0_92] : memref<2x3x224x128xf32, #tpu.memory_space<vmem>>, vector<1x1x224x128xf32>
    %70 = vector.shape_cast %69 : vector<1x1x224x128xf32> to vector<224x128xf32>
    %cst_93 = arith.constant dense<0.000000e+00> : vector<12x128xf32>
    %71 = tpu.matmul %68, %70, %cst_93 {dimension_numbers = #tpu.dot_dimension_numbers<[1], [0], [0], [1], [0, 0, 1, 1], [], []>} : vector<12x224xf32>, vector<224x128xf32>, vector<12x128xf32> -> vector<12x128xf32>
    %72 = arith.addf %67, %71 : vector<12x128xf32>
    %73 = arith.maximumf %58, %72 : vector<12x128xf32>
    %c0_94 = arith.constant 0 : index
    %c0_95 = arith.constant 0 : index
    %74 = vector.load %arg6[%c0_94, %c0_95] : memref<1x128xf32, #tpu.memory_space<vmem>>, vector<1x128xf32>
    %75 = vector.broadcast %74 : vector<1x128xf32> to vector<12x128xf32>
    %76 = arith.addf %73, %75 : vector<12x128xf32>
    %cst_96 = arith.constant 0.000000e+00 : f32
    %77 = vector.broadcast %cst_96 : f32 to vector<12x128xf32>
    %78 = arith.cmpf oge, %76, %77 : vector<12x128xf32>
    %cst_97 = arith.constant 0.00999999977 : f32
    %79 = vector.broadcast %cst_97 : f32 to vector<12x128xf32>
    %80 = arith.mulf %79, %76 : vector<12x128xf32>
    %81 = arith.select %78, %76, %80 : vector<12x128xi1>, vector<12x128xf32>
    %c0_98 = arith.constant 0 : index
    %c0_99 = arith.constant 0 : index
    %c0_100 = arith.constant 0 : index
    %82 = vector.load %arg7[%c0_98, %c0_99, %c0_100] : memref<2x4x12xf32, #tpu.memory_space<vmem>>, vector<1x4x12xf32>
    %83 = vector.shape_cast %82 : vector<1x4x12xf32> to vector<4x12xf32>
    %cst_101 = arith.constant dense<0.000000e+00> : vector<4x128xf32>
    %84 = tpu.matmul %83, %81, %cst_101 {dimension_numbers = #tpu.dot_dimension_numbers<[1], [0], [0], [1], [0, 0, 1, 1], [], []>} : vector<4x12xf32>, vector<12x128xf32>, vector<4x128xf32> -> vector<4x128xf32>
    %c1_102 = arith.constant 1 : index
    %c0_103 = arith.constant 0 : index
    %c0_104 = arith.constant 0 : index
    %85 = vector.load %arg7[%c1_102, %c0_103, %c0_104] : memref<2x4x12xf32, #tpu.memory_space<vmem>>, vector<1x4x12xf32>
    %86 = vector.shape_cast %85 : vector<1x4x12xf32> to vector<4x12xf32>
    %cst_105 = arith.constant dense<0.000000e+00> : vector<4x128xf32>
    %87 = tpu.matmul %86, %81, %cst_105 {dimension_numbers = #tpu.dot_dimension_numbers<[1], [0], [0], [1], [0, 0, 1, 1], [], []>} : vector<4x12xf32>, vector<12x128xf32>, vector<4x128xf32> -> vector<4x128xf32>
    %88 = arith.maximumf %84, %87 : vector<4x128xf32>
    %89 = arith.truncf %88 : vector<4x128xf32> to vector<4x128xbf16>
    %c0_106 = arith.constant 0 : index
    %c0_107 = arith.constant 0 : index
    %90 = vector.load %arg8[%c0_106, %c0_107] : memref<4x128xbf16, #tpu.memory_space<vmem>>, vector<4x128xbf16>
    tpu.vector_store %arg8[%c0_106, %c0_107], %89 {strides = array<i32>} : memref<4x128xbf16, #tpu.memory_space<vmem>>, vector<4x128xbf16>,
    return
  }
  func.func @transform_0(%arg0: i32) -> (i32, i32) {
    %c0_i32 = arith.constant 0 : i32
    %c0_i32_0 = arith.constant 0 : i32
    return %arg0, %c0_i32 : i32, i32
  }
  func.func @transform_1(%arg0: i32) -> (i32, i32, i32, i32) {
    %c0_i32 = arith.constant 0 : i32
    %c0_i32_0 = arith.constant 0 : i32
    %c0_i32_1 = arith.constant 0 : i32
    %c0_i32_2 = arith.constant 0 : i32
    %c0_i32_3 = arith.constant 0 : i32
    return %c0_i32, %c0_i32_0, %c0_i32_1, %c0_i32_2 : i32, i32, i32, i32
  }
  func.func @transform_2(%arg0: i32) -> (i32, i32) {
    %c0_i32 = arith.constant 0 : i32
    %c0_i32_0 = arith.constant 0 : i32
    %c0_i32_1 = arith.constant 0 : i32
    return %c0_i32, %c0_i32_0 : i32, i32
  }
  func.func @transform_3(%arg0: i32) -> (i32, i32, i32) {
    %c0_i32 = arith.constant 0 : i32
    %c0_i32_0 = arith.constant 0 : i32
    %c0_i32_1 = arith.constant 0 : i32
    %c0_i32_2 = arith.constant 0 : i32
    return %c0_i32, %c0_i32_0, %c0_i32_1 : i32, i32, i32
  }
  func.func @transform_4(%arg0: i32) -> (i32, i32, i32, i32) {
    %c0_i32 = arith.constant 0 : i32
    %c0_i32_0 = arith.constant 0 : i32
    %c0_i32_1 = arith.constant 0 : i32
    %c0_i32_2 = arith.constant 0 : i32
    %c0_i32_3 = arith.constant 0 : i32
    return %c0_i32, %c0_i32_0, %c0_i32_1, %c0_i32_2 : i32, i32, i32, i32
  }
  func.func @transform_5(%arg0: i32) -> (i32, i32) {
    %c0_i32 = arith.constant 0 : i32
    %c0_i32_0 = arith.constant 0 : i32
    %c0_i32_1 = arith.constant 0 : i32
    return %c0_i32, %c0_i32_0 : i32, i32
  }
  func.func @transform_6(%arg0: i32) -> (i32, i32, i32) {
    %c0_i32 = arith.constant 0 : i32
    %c0_i32_0 = arith.constant 0 : i32
    %c0_i32_1 = arith.constant 0 : i32
    %c0_i32_2 = arith.constant 0 : i32
    return %c0_i32, %c0_i32_0, %c0_i32_1 : i32, i32, i32
  }
  func.func @transform_7(%arg0: i32) -> (i32, i32) {
    %c0_i32 = arith.constant 0 : i32
    %c0_i32_0 = arith.constant 0 : i32
    return %arg0, %c0_i32 : i32, i32
  }
}

</mosaic_0001>

<bundles_post_ra>
// kernel: tpu_custom_call.1
= control target key start
LH: loop header
LB: loop body
LE: loop exit
PB: predicated region body
PF: predicated region fallthrough
CT: control target
= control target key end

     0   :  { %12 = vsyncpa [#allocation4], 0  ;;  %s2666_s0 = inlined_call_operand.vmem [shape: f32[32,32], index: 0, kind: input, shape index: {}]   ;;  %s2667_s1 = inlined_call_operand.hbm [shape: f32[2,3,32,224], index: 1, kind: input, shape index: {}]   ;;  %s2668_s2 = inlined_call_operand.vmem [shape: f32[1,224], index: 2, kind: input, shape index: {}]   ;;  %s2669_s3 = inlined_call_operand.vmem [shape: f32[2,14,30], index: 3, kind: input, shape index: {}]   ;;  %s2670_s4 = inlined_call_operand.hbm [shape: f32[2,3,224,128], index: 4, kind: input, shape index: {}]   ;;  %s2671_s5 = inlined_call_operand.vmem [shape: f32[1,128], index: 5, kind: input, shape index: {}]   ;;  %s2672_s6 = inlined_call_operand.vmem [shape: f32[2,4,12], index: 6, kind: input, shape index: {}]   ;;  %s2673_s7 = inlined_call_operand.hbm [shape: bf16[4,128], index: 7, kind: output, shape index: {}]  }
   0x1   :  { %13 = vsyncpa [#allocation7], 0 }
   0x2   :  { %14 = vsyncpa [#allocation5], 0  ;;  %s2347_s24 = smov [#allocation3]   ;;  %s2275_s28 = scalar_lea.hbm %s2667_s1, 6144 }
   0x3   :  { %s22_s25 = sshll.u32 %s2347_s24, 4  ;;  %p2276_p0 = scmp.ne.s32.totalorder %s2667_s1, %s2275_s28  ;;  %s23_s25 = int_to_ptr.vmem [resolvable:$true] %s22_s25 }
   0x4   :  { %p2279_p1 = scmp.lt.u32.totalorder %s2275_s28, %s2667_s1 }
   0x6   :  { %p2281_p2 = pnand %p2279_p1, %p2276_p0 }
   0x8   :  { %2284 = shalt.err (!%p2281_p2)
}
   0x9   :  { %s2285_s10 = scalar_lea.vmem %s23_s25, 6144  ;;  %p2290_p4 = scmp.lt.s32.totalorder %s23_s25, %s23_s25 }
   0xa   :  { %p2286_p3 = scmp.ne.s32.totalorder %s23_s25, %s2285_s10  ;;  %p2291_p5 = scmp.lt.s32.totalorder %s2285_s10, %s2285_s10 }
   0xc   :  { %p2292_p6 = por %p2291_p5, %p2290_p4 }
   0xe   :  { %p2293_p7 = pnand %p2292_p6, %p2286_p3 }
  0x10   :  { %2296 = shalt.err (!%p2293_p7)
}
  0x11   :  { %s2348_s11 = smov 256   ;;  %s2349_s12 = smov 16  }
  0x12   :  { %28 = dma.hbm_to_vmem [thread:$0]  %s2667_s1, 6144, %s23_s25, [#allocation4], %s2348_s11, %s2348_s11, %s2349_s12  }
  0x13   :  { %s2350_s15 = smov [#allocation6]   ;;  %s2297_s19 = scalar_lea.hbm %s2670_s4, 21504 }
  0x14   :  { %s38_s16 = sshll.u32 %s2350_s15, 4  ;;  %p2298_p8 = scmp.ne.s32.totalorder %s2670_s4, %s2297_s19  ;;  %s39_s16 = int_to_ptr.vmem [resolvable:$true] %s38_s16 }
  0x15   :  { %p2301_p9 = scmp.lt.u32.totalorder %s2297_s19, %s2670_s4 }
  0x17   :  { %p2303_p10 = pnand %p2301_p9, %p2298_p8 }
  0x19   :  { %2306 = shalt.err (!%p2303_p10)
}
  0x1a   :  { %s2307_s24 = scalar_lea.vmem %s39_s16, 21504  ;;  %p2312_p12 = scmp.lt.s32.totalorder %s39_s16, %s39_s16 }
  0x1b   :  { %p2308_p11 = scmp.ne.s32.totalorder %s39_s16, %s2307_s24  ;;  %p2313_p13 = scmp.lt.s32.totalorder %s2307_s24, %s2307_s24 }
  0x1d   :  { %p2314_p0 = por %p2313_p13, %p2312_p12 }
  0x1f   :  { %p2315_p1 = pnand %p2314_p0, %p2308_p11 }
  0x21   :  { %2318 = shalt.err (!%p2315_p1)
}
  0x22   :  { %s2351_s1 = smov 128   ;;  %s2352_s25 = smov 8  }
  0x23   :  { %44 = dma.hbm_to_vmem [thread:$0]  %s2670_s4, 21504, %s39_s16, [#allocation7], %s2351_s1, %s2351_s1, %s2352_s25  }
  0x24   :  { %2341 = dma.done.wait [#allocation4], 6144  }
  0x25   :  { %2342 = vsyncadd [#allocation4], 4294961152 }
  0x26   :  { %2343 = dma.done.wait [#allocation7], 21504  }
  0x27   :  { %2344 = vsyncadd [#allocation7], 4294945792  ;;  %v2353_v0 = vmov 0.0   ;;  %v73_v1 = vld [vmem:[#allocation3 + $0x48] sm:$0xff]  ;;  %v75_v2 = vld [vmem:[#allocation3 + $0x58] sm:$0xff]  ;;  %vm80_vm0 = vcmask 261120  }
  0x28   :  { %157 = vmatprep.mubr.f32.mxu0 %v2353_v0  ;;  %487 = vmatprep.mubr.f32.mxu1 %v2353_v0  ;;  %v416_v3 = vld [vmem:[#allocation3 + $0x108] sm:$0xff]  ;;  %v1888_v4 = vpack.c.bf16 %v75_v2, %v73_v1  ;;  %v418_v5 = vld [vmem:[#allocation3 + $0x118] sm:$0xff]  ;;  %v72_v6 = vld [vmem:[#allocation3 + $0x40] sm:$0xff]  ;;  %vm768_vm6 = vcmask 1045504   ;;  %vm2354_vm10 = vmmov 1   ;;  %vm761_vm12 = vcmask 244736  }
  0x29   :  { %v74_v7 = vld [vmem:[#allocation3 + $0x50] sm:$0xff]  ;;  %v1912_v8 = vpack.c.bf16 %v418_v5, %v416_v3  ;;  %v415_v10 = vld [vmem:[#allocation3 + $0x100] sm:$0xff]  ;;  %v77_v12 = vld [vmem:[#allocation3 + $0x68] sm:$0xff]  ;;  %vm943_vm13 = vcmask 785408   ;;  %vm946_vm14 = vcmask 783360   ;;  %vm1017_vm15 = vcmask 1046528  }
  0x2a   :  { %v1890_v9 = vpack.c.bf16 %v74_v7, %v72_v6  ;;  %v417_v11 = vld [vmem:[#allocation3 + $0x110] sm:$0xff]  ;;  %1889 = vmatprep.subr.bf16.mxu0 %v1888_v4  ;;  %v79_v14 = vld [vmem:[#allocation3 + $0x78] sm:$0xff]  ;;  %v420_v15 = vld [vmem:[#allocation3 + $0x128] sm:$0xff]  ;;  %s2357_s15 = smov [#allocation8]  }
  0x2b   :  { %v1914_v13 = vpack.c.bf16 %v417_v11, %v415_v10  ;;  %v422_v16 = vld [vmem:[#allocation3 + $0x138] sm:$0xff]  ;;  %1913 = vmatprep.subr.bf16.mxu1 %v1912_v8  ;;  %v1892_v17 = vpack.c.bf16 %v79_v14, %v77_v12  ;;  %v76_v19 = vld [vmem:[#allocation3 + $0x60] sm:$0xff]  ;;  %v78_v20 = vld [vmem:[#allocation3 + $0x70] sm:$0xff]  ;;  %s1806_s16 = sshll.u32 %s2357_s15, 4  ;;  %s1807_s16 = int_to_ptr.vmem [resolvable:$true] %s1806_s16 }
  0x2c   :  { %1891 = vmatpush1.bf16.msra.mxu0 %v1890_v9  ;;  %v1916_v18 = vpack.c.bf16 %v422_v16, %v420_v15  ;;  %v419_v21 = vld [vmem:[#allocation3 + $0x120] sm:$0xff]  ;;  %v1894_v22 = vpack.c.bf16 %v78_v20, %v76_v19  ;;  %v421_v23 = vld [vmem:[#allocation3 + $0x130] sm:$0xff]  ;;  %v60_v25 = vld [vmem:[#allocation3 + $0x8] sm:$0xff]  ;;  %s2319_s17 = scalar_lea.vmem %s1807_s16, 32  ;;  %p2324_p3 = scmp.lt.s32.totalorder %s1807_s16, %s1807_s16 }
  0x2d   :  { %1915 = vmatpush1.bf16.msra.mxu1 %v1914_v13  ;;  %1893 = vmatprep.subr.bf16.mxu0 %v1892_v17  ;;  %v1918_v24 = vpack.c.bf16 %v421_v23, %v419_v21  ;;  %v62_v26 = vld [vmem:[#allocation3 + $0x18] sm:$0xff]  ;;  %v407_v27 = vld [vmem:[#allocation3 + $0xc8] sm:$0xff]  ;;  %v59_v30 = vld [vmem:[#allocation3] sm:$0xff]  ;;  %p2320_p2 = scmp.ne.s32.totalorder %s1807_s16, %s2319_s17  ;;  %p2325_p4 = scmp.lt.s32.totalorder %s2319_s17, %s2319_s17 }
  0x2e   :  { %1917 = vmatprep.subr.bf16.mxu1 %v1916_v18  ;;  %v1896_v28 = vpack.c.bf16 %v62_v26, %v60_v25  ;;  %v409_v29 = vld [vmem:[#allocation3 + $0xd8] sm:$0xff]  ;;  %v61_v31 = vld [vmem:[#allocation3 + $0x10] sm:$0xff]  ;;  %v67_v32 = vld [vmem:[%s2666_s0 + $0x1] sm:$0xff] }
  0x2f   :  { %v1920_v33 = vpack.c.bf16 %v409_v29, %v407_v27  ;;  %v406_v34 = vld [vmem:[#allocation3 + $0xc0] sm:$0xff]  ;;  %v408_v35 = vld [vmem:[#allocation3 + $0xd0] sm:$0xff]  ;;  %v1898_v36 = vpack.c.bf16 %v61_v31, %v59_v30  ;;  %v64_v37 = vld [vmem:[#allocation3 + $0x28] sm:$0xff]  ;;  %p2326_p5 = por %p2325_p4, %p2324_p3 }
  0x30   :  { %1895 = vmatpush1.bf16.msra.mxu0 %v1894_v22  ;;  %v66_v38 = vld [vmem:[#allocation3 + $0x38] sm:$0xff]  ;;  %v1922_v39 = vpack.c.bf16 %v408_v35, %v406_v34  ;;  %v411_v41 = vld [vmem:[#allocation3 + $0xe8] sm:$0xff]  ;;  %v63_v43 = vld [vmem:[#allocation3 + $0x20] sm:$0xff]  ;;  %v717_v22 = vlaneseq }
  0x31   :  { %1919 = vmatpush1.bf16.msra.mxu1 %v1918_v24  ;;  %1897 = vmatprep.subr.bf16.mxu0 %v1896_v28  ;;  %v1900_v40 = vpack.c.bf16 %v66_v38, %v64_v37  ;;  %v413_v42 = vld [vmem:[#allocation3 + $0xf8] sm:$0xff]  ;;  %v65_v45 = vld [vmem:[#allocation3 + $0x30] sm:$0xff]  ;;  %v410_v46 = vld [vmem:[#allocation3 + $0xe0] sm:$0xff]  ;;  %p2327_p6 = pnand %p2326_p5, %p2320_p2 }
  0x32   :  { %1921 = vmatprep.subr.bf16.mxu1 %v1920_v33  ;;  %v1924_v44 = vpack.c.bf16 %v413_v42, %v411_v41  ;;  %v412_v47 = vld [vmem:[#allocation3 + $0xf0] sm:$0xff]  ;;  %v289_v49 = vld [vmem:[#allocation3 + $0x88] sm:$0xff]  ;;  %v1902_v50 = vpack.c.bf16 %v65_v45, %v63_v43  ;;  %v291_v51 = vld [vmem:[#allocation3 + $0x98] sm:$0xff]  ;;  %v718_v23 = vshrl.u32 %v717_v22, 7 }
  0x33   :  { %1816 = vmatmul.mubr.msk.f32.vlgmr.msra.gmra.mrb[0].mxu0 %vm80_vm0, %v67_v32  ;;  %v68_v48 = vld [vmem:[%s2666_s0 + $0x9] sm:$0xff]  ;;  %v605_v53 = vld [vmem:[#allocation3 + $0x158] sm:$0xff]  ;;  %v1926_v54 = vpack.c.bf16 %v412_v47, %v410_v46  ;;  %v1904_v55 = vpack.c.bf16 %v291_v51, %v289_v49  ;;  %v288_v59 = vld [vmem:[#allocation3 + $0x80] sm:$0xff] }
  0x34   :  { %1828 = vmatmul.mubr.msk.f32.vlgmr.msra.gmra.mrb[0].mxu1 %vm80_vm0, %v67_v32  ;;  %163 = vmatprep.mubr.f32.mxu0 %v2353_v0  ;;  %v603_v52 = vld [vmem:[#allocation3 + $0x148] sm:$0xff]  ;;  %v69_v57 = vld [vmem:[%s2666_s0 + $0x11] sm:$0xff]  ;;  %v70_v58 = vld [vmem:[%s2666_s0 + $0x19] sm:$0x3f]  ;;  %v719_v24 = vsub.s32 0, %v718_v23  ;;  %v723_v26 = vsub.s32 1, %v718_v23 }
  0x35   :  { %493 = vmatprep.mubr.f32.mxu1 %v2353_v0  ;;  %1899 = vmatpush1.bf16.msra.mxu0 %v1898_v36  ;;  %v1928_v56 = vpack.c.bf16 %v605_v53, %v603_v52  ;;  %v290_v60 = vld [vmem:[#allocation3 + $0x90] sm:$0xff]  ;;  %v602_v61 = vld [vmem:[#allocation3 + $0x140] sm:$0xff]  ;;  %v293_v63 = vld [vmem:[#allocation3 + $0xa8] sm:$0xff] }
  0x36   :  { %1923 = vmatpush1.bf16.msra.mxu1 %v1922_v39  ;;  %1901 = vmatprep.subr.bf16.mxu0 %v1900_v40  ;;  %v604_v62 = vld [vmem:[#allocation3 + $0x150] sm:$0xff]  ;;  %v295_v1 = vld [vmem:[#allocation3 + $0xb8] sm:$0xff]  ;;  %v55_v2 = vld [vmem:[%s2666_s0] sm:$0xff]  ;;  %v1906_v5 = vpack.c.bf16 %v290_v60, %v288_v59 }
  0x37   :  { %1817 = vmatmul.mubr.msk.f32.gmra.mrb[2].mxu0 %vm80_vm0, %v68_v48  ;;  %1925 = vmatprep.subr.bf16.mxu1 %v1924_v44  ;;  %v607_v3 = vld [vmem:[#allocation3 + $0x168] sm:$0xff]  ;;  %v609_v4 = vld [vmem:[#allocation3 + $0x178] sm:$0xff]  ;;  %v1930_v6 = vpack.c.bf16 %v604_v62, %v602_v61  ;;  %v1908_v7 = vpack.c.bf16 %v295_v1, %v293_v63  ;;  %v292_v8 = vld [vmem:[#allocation3 + $0xa0] sm:$0xff] }
  0x38   :  { %1829 = vmatmul.mubr.msk.f32.gmra.mrb[2].mxu1 %vm80_vm0, %v68_v48  ;;  %169 = vmatprep.mubr.f32.mxu0 %v2353_v0  ;;  %v294_v9 = vld [vmem:[#allocation3 + $0xb0] sm:$0xff]  ;;  %v1932_v10 = vpack.c.bf16 %v609_v4, %v607_v3  ;;  %v606_v11 = vld [vmem:[#allocation3 + $0x160] sm:$0xff]  ;;  %v56_v13 = vld [vmem:[%s2666_s0 + $0x8] sm:$0xff] }
  0x39   :  { %499 = vmatprep.mubr.f32.mxu1 %v2353_v0  ;;  %1903 = vmatpush1.bf16.msra.mxu0 %v1902_v50  ;;  %v608_v12 = vld [vmem:[#allocation3 + $0x170] sm:$0xff]  ;;  %v1910_v14 = vpack.c.bf16 %v294_v9, %v292_v8  ;;  %v58_v17 = vld [vmem:[%s2666_s0 + $0x18] sm:$0x3f]  ;;  %v283_v18 = vld [vmem:[%s2666_s0 + $0x2] sm:$0xff] }
  0x3a   :  { %1927 = vmatpush1.bf16.msra.mxu1 %v1926_v54  ;;  %1905 = vmatprep.subr.bf16.mxu0 %v1904_v55  ;;  %v1934_v15 = vpack.c.bf16 %v608_v12, %v606_v11  ;;  %v57_v16 = vld [vmem:[%s2666_s0 + $0x10] sm:$0xff]  ;;  %v286_v21 = vld [vmem:[%s2666_s0 + $0x1a] sm:$0x3f]  ;;  %v715_v25 = vld [vmem:[%s2668_s2] sm:$0x3] }
  0x3b   :  { %1818 = vmatmul.mubr.msk.f32.gmra.mrb[4].mxu0 %vm80_vm0, %v69_v57  ;;  %1929 = vmatprep.subr.bf16.mxu1 %v1928_v56  ;;  %v284_v19 = vld [vmem:[%s2666_s0 + $0xa] sm:$0xff]  ;;  %v285_v20 = vld [vmem:[%s2666_s0 + $0x12] sm:$0xff]  ;;  %v720_v28 = vrot.slane %v715_v25, %v719_v24  ;;  %v724_v31 = vrot.slane %v715_v25, %v723_v26  ;;  %vm1941_vm11 = vmpackc.low %vm768_vm6, %vm2354_vm10  ;;  %v2355_v24 = vmov 0.0|0.0  }
  0x3c   :  { %1830 = vmatmul.mubr.msk.f32.gmra.mrb[4].mxu1 %vm80_vm0, %v69_v57  ;;  %175 = vmatprep.mubr.f32.mxu0 %v2353_v0  ;;  %v759_v22 = vld [vmem:[%s2669_s3] sm:$0xff]  ;;  %v1844_v23 = vld [vmem:[%s2669_s3 + $0x10] sm:$0xff] }
  0x3d   :  { %505 = vmatprep.mubr.f32.mxu1 %v2353_v0 }
  0x3f   :  { %1819 = vmatmul.mubr.msk.f32.gmra.mrb[6].mxu0 %vm80_vm0, %v70_v58 }
  0x40   :  { %1831 = vmatmul.mubr.msk.f32.gmra.mrb[6].mxu1 %vm80_vm0, %v70_v58  ;;  %258 = vmatprep.mubr.f32.mxu0 %v2353_v0 }
  0x41   :  { %576 = vmatprep.mubr.f32.mxu1 %v2353_v0 }
  0x43   :  { %1820 = vmatmul.mubr.msk.f32.vlgmr.msra.gmra.mrb[0].mxu0 %vm80_vm0, %v55_v2 }
  0x44   :  { %1832 = vmatmul.mubr.msk.f32.vlgmr.msra.gmra.mrb[0].mxu1 %vm80_vm0, %v55_v2  ;;  %264 = vmatprep.mubr.f32.mxu0 %v2353_v0 }
  0x45   :  { %582 = vmatprep.mubr.f32.mxu1 %v2353_v0  ;;  %1907 = vmatpush1.bf16.msra.mxu0 %v1906_v5 }
  0x46   :  { %1931 = vmatpush1.bf16.msra.mxu1 %v1930_v6  ;;  %1909 = vmatprep.subr.bf16.mxu0 %v1908_v7 }
  0x47   :  { %1821 = vmatmul.mubr.msk.f32.gmra.mrb[2].mxu0 %vm80_vm0, %v56_v13  ;;  %1933 = vmatprep.subr.bf16.mxu1 %v1932_v10 }
  0x48   :  { %1833 = vmatmul.mubr.msk.f32.gmra.mrb[2].mxu1 %vm80_vm0, %v56_v13  ;;  %270 = vmatprep.mubr.f32.mxu0 %v2353_v0 }
  0x49   :  { %588 = vmatprep.mubr.f32.mxu1 %v2353_v0  ;;  %1911 = vmatpush1.bf16.msra.mxu0 %v1910_v14 }
  0x4a   :  { %1935 = vmatpush1.bf16.msra.mxu1 %v1934_v15 }
  0x4b   :  { %1822 = vmatmul.mubr.msk.f32.gmra.mrb[4].mxu0 %vm80_vm0, %v57_v16 }
  0x4c   :  { %1834 = vmatmul.mubr.msk.f32.gmra.mrb[4].mxu1 %vm80_vm0, %v57_v16  ;;  %276 = vmatprep.mubr.f32.mxu0 %v2353_v0 }
  0x4d   :  { %594 = vmatprep.mubr.f32.mxu1 %v2353_v0 }
  0x4f   :  { %1823 = vmatmul.mubr.msk.f32.gmra.mrb[6].mxu0 %vm80_vm0, %v58_v17 }
  0x50   :  { %1835 = vmatmul.mubr.msk.f32.gmra.mrb[6].mxu1 %vm80_vm0, %v58_v17  ;;  %372 = vmatprep.mubr.f32.mxu0 %v2353_v0 }
  0x51   :  { %674 = vmatprep.mubr.f32.mxu1 %v2353_v0 }
  0x53   :  { %1824 = vmatmul.mubr.msk.f32.vlgmr.msra.gmra.mrb[0].mxu0 %vm80_vm0, %v283_v18 }
  0x54   :  { %1836 = vmatmul.mubr.msk.f32.vlgmr.msra.gmra.mrb[0].mxu1 %vm80_vm0, %v283_v18  ;;  %378 = vmatprep.mubr.f32.mxu0 %v2353_v0  ;;  %v985_v18 = vld [vmem:[#allocation6 + $0xe0] sm:$0xff] }
  0x55   :  { %680 = vmatprep.mubr.f32.mxu1 %v2353_v0 }
  0x57   :  { %1825 = vmatmul.mubr.msk.f32.gmra.mrb[2].mxu0 %vm80_vm0, %v284_v19 }
  0x58   :  { %1837 = vmatmul.mubr.msk.f32.gmra.mrb[2].mxu1 %vm80_vm0, %v284_v19  ;;  %384 = vmatprep.mubr.f32.mxu0 %v2353_v0  ;;  %v986_v19 = vld [vmem:[#allocation6 + $0xe8] sm:$0xff] }
  0x59   :  { %686 = vmatprep.mubr.f32.mxu1 %v2353_v0  ;;  %v1957_v25 = vpack.c.bf16 %v986_v19, %v985_v18  ;;  %v1361_v18 = vld [vmem:[#allocation6 + $0x418] sm:$0xff] }
  0x5b   :  { %1826 = vmatmul.mubr.msk.f32.gmra.mrb[4].mxu0 %vm80_vm0, %v285_v20 }
  0x5c   :  { %1838 = vmatmul.mubr.msk.f32.gmra.mrb[4].mxu1 %vm80_vm0, %v285_v20  ;;  %390 = vmatprep.mubr.f32.mxu0 %v2353_v0  ;;  %v1342_v20 = vld [vmem:[#allocation6 + $0x380] sm:$0xff] }
  0x5d   :  { %692 = vmatprep.mubr.f32.mxu1 %v2353_v0 }
  0x5f   :  { %1827 = vmatmul.mubr.msk.f32.gmra.mrb[6].mxu0 %vm80_vm0, %v286_v21 }
  0x60   :  { %1839 = vmatmul.mubr.msk.f32.gmra.mrb[6].mxu1 %vm80_vm0, %v286_v21  ;;  %839 = vmatprep.mubr.f32.mxu0 %v2353_v0  ;;  %v1343_v21 = vld [vmem:[#allocation6 + $0x388] sm:$0xff]  ;;  %vm2356_vm0 = vmmov 0  }
  0x61   :  { %925 = vmatprep.mubr.f32.mxu1 %v2353_v0  ;;  %v2083_v26 = vpack.c.bf16 %v1343_v21, %v1342_v20  ;;  %v1005_v20 = vld [vmem:[#allocation6 + $0x180] sm:$0xff]  ;;  %v1006_v21 = vld [vmem:[#allocation6 + $0x188] sm:$0xff] }
 0x126   :  { %v374_v27 = vpop.f32.mrb[0].mxu0 }
 0x127   :  { %v676_v29 = vpop.f32.mrb[0].mxu1  ;;  %v376_v30 = vpop.f32.mrb[1].mxu0 }
 0x128   :  { %v707_v32 = vmax.f32 %v374_v27, %v676_v29  ;;  %v678_v33 = vpop.f32.mrb[1].mxu1  ;;  %v987_v27 = vld [vmem:[#allocation6 + $0xf0] sm:$0xff] }
 0x129   :  { %v708_v34 = vmax.f32 %v376_v30, %v678_v33  ;;  %v1344_v29 = vld [vmem:[#allocation6 + $0x390] sm:$0xff]  ;;  %v1345_v30 = vld [vmem:[#allocation6 + $0x398] sm:$0xff] }
 0x12a   :  { %v727_v35 = vadd.f32 %v720_v28, %v707_v32  ;;  %v380_v36 = vpop.f32.mrb[2].mxu0  ;;  %v1845_v32 = vld [vmem:[%s2669_s3 + $0x18] sm:$0x3f] }
 0x12b   :  { %v728_v37 = vadd.f32 %v724_v31, %v708_v34  ;;  %v682_v38 = vpop.f32.mrb[2].mxu1  ;;  %v382_v39 = vpop.f32.mrb[3].mxu0  ;;  %v2086_v34 = vpack.c.bf16 %v1345_v30, %v1344_v29  ;;  %v1364_v29 = vld [vmem:[#allocation6 + $0x430] sm:$0xff] }
 0x12c   :  { %v709_v40 = vmax.f32 %v380_v36, %v682_v38  ;;  %v684_v41 = vpop.f32.mrb[3].mxu1  ;;  %v743_v43 = vmul.f32 0.01, %v727_v35  ;;  %vm735_vm1 = vcmp.ge.f32.partialorder %v727_v35, 0.0  ;;  %v990_v36 = vld [vmem:[#allocation6 + $0x108] sm:$0xff] }
 0x12d   :  { %v710_v42 = vmax.f32 %v382_v39, %v684_v41  ;;  %v744_v46 = vmul.f32 0.01, %v728_v37  ;;  %vm736_vm2 = vcmp.ge.f32.partialorder %v728_v37, 0.0  ;;  %v1347_v38 = vld [vmem:[#allocation6 + $0x3a8] sm:$0xff]  ;;  %v991_v41 = vld [vmem:[#allocation6 + $0x110] sm:$0xff] }
 0x12e   :  { %v729_v44 = vadd.f32 %v720_v28, %v709_v40  ;;  %v386_v45 = vpop.f32.mrb[4].mxu0  ;;  %v751_v55 = vsel %vm735_vm1, %v727_v35, %v743_v43  ;;  %v989_v35 = vld [vmem:[#allocation6 + $0x100] sm:$0xff]  ;;  %v1348_v43 = vld [vmem:[#allocation6 + $0x3b0] sm:$0xff]  ;;  %vm1648_vm1 = vcmask 1043456  }
 0x12f   :  { %v730_v47 = vadd.f32 %v724_v31, %v710_v42  ;;  %v688_v48 = vpop.f32.mrb[4].mxu1  ;;  %v388_v49 = vpop.f32.mrb[5].mxu0  ;;  %v752_v62 = vsel %vm736_vm2, %v728_v37, %v744_v46  ;;  %v1346_v37 = vld [vmem:[#allocation6 + $0x3a0] sm:$0xff]  ;;  %v1963_v39 = vpack.c.bf16 %v990_v36, %v989_v35  ;;  %v992_v42 = vld [vmem:[#allocation6 + $0x118] sm:$0xff] }
 0x130   :  { %vm737_vm3 = vcmp.ge.f32.partialorder %v729_v44, 0.0  ;;  %v745_v50 = vmul.f32 0.01, %v729_v44  ;;  %v711_v51 = vmax.f32 %v386_v45, %v688_v48  ;;  %v690_v52 = vpop.f32.mrb[5].mxu1  ;;  %v2089_v40 = vpack.c.bf16 %v1347_v38, %v1346_v37  ;;  %v994_v48 = vld [vmem:[#allocation6 + $0x128] sm:$0xff]  ;;  %v1366_v35 = vld [vmem:[#allocation6 + $0x440] sm:$0xff] }
 0x131   :  { %vm738_vm4 = vcmp.ge.f32.partialorder %v730_v47, 0.0  ;;  %v746_v53 = vmul.f32 0.01, %v730_v47  ;;  %v712_v54 = vmax.f32 %v388_v49, %v690_v52  ;;  %v1966_v45 = vpack.c.bf16 %v992_v42, %v991_v41  ;;  %v1350_v49 = vld [vmem:[#allocation6 + $0x3c0] sm:$0xff]  ;;  %v1367_v37 = vld [vmem:[#allocation6 + $0x448] sm:$0xff]  ;;  %v1011_v38 = vld [vmem:[#allocation6 + $0x1b0] sm:$0xff] }
 0x132   :  { %v753_v56 = vsel %vm737_vm3, %v729_v44, %v745_v50  ;;  %v731_v57 = vadd.f32 %v720_v28, %v711_v51  ;;  %v392_v58 = vpop.f32.mrb[6].mxu0  ;;  %v1349_v44 = vld [vmem:[#allocation6 + $0x3b8] sm:$0xff]  ;;  %v1351_v50 = vld [vmem:[#allocation6 + $0x3c8] sm:$0xff]  ;;  %v1368_v41 = vld [vmem:[#allocation6 + $0x450] sm:$0xff] }
 0x133   :  { %v732_v59 = vadd.f32 %v724_v31, %v712_v54  ;;  %v694_v60 = vpop.f32.mrb[6].mxu1  ;;  %v394_v61 = vpop.f32.mrb[7].mxu0  ;;  %v754_v63 = vsel %vm738_vm4, %v730_v47, %v746_v53  ;;  %v1938_v1 = vpack.c.bf16 %v753_v56, %v751_v55  ;;  %v2092_v46 = vpack.c.bf16 %v1349_v44, %v1348_v43  ;;  %v993_v47 = vld [vmem:[#allocation6 + $0x120] sm:$0xff]  ;;  %v995_v53 = vld [vmem:[#allocation6 + $0x130] sm:$0xff]  ;;  %v996_v54 = vld [vmem:[#allocation6 + $0x138] sm:$0xff] }
 0x134   :  { %v713_v2 = vmax.f32 %v392_v58, %v694_v60  ;;  %v696_v3 = vpop.f32.mrb[7].mxu1  ;;  %v1936_v4 = vpack.c.bf16 %v754_v63, %v752_v62  ;;  %v747_v6 = vmul.f32 0.01, %v731_v57  ;;  %vm739_vm5 = vcmp.ge.f32.partialorder %v731_v57, 0.0  ;;  %v1352_v55 = vld [vmem:[#allocation6 + $0x3d0] sm:$0xff]  ;;  %v1353_v56 = vld [vmem:[#allocation6 + $0x3d8] sm:$0xff]  ;;  %vm2210_vm4 = vmpackc.low %vm1648_vm1, %vm2354_vm10 }
 0x135   :  { %v714_v5 = vmax.f32 %v394_v61, %v696_v3  ;;  %v748_v8 = vmul.f32 0.01, %v732_v59  ;;  %vm740_vm7 = vcmp.ge.f32.partialorder %v732_v59, 0.0  ;;  %v1969_v51 = vpack.c.bf16 %v994_v48, %v993_v47  ;;  %v998_v60 = vld [vmem:[#allocation6 + $0x148] sm:$0xff]  ;;  %v1354_v61 = vld [vmem:[#allocation6 + $0x3e0] sm:$0xff]  ;;  %v1000_v3 = vld [vmem:[#allocation6 + $0x158] sm:$0xff] }
 0x136   :  { %v733_v7 = vadd.f32 %v720_v28, %v713_v2  ;;  %1937 = vmatprep.subr.bf16.mxu0 %v1936_v4  ;;  %1947 = vmatprep.subr.bf16.mxu1 %v1936_v4  ;;  %v755_v12 = vsel %vm739_vm5, %v731_v57, %v747_v6  ;;  %v988_v28 = vld [vmem:[#allocation6 + $0xf8] sm:$0xff]  ;;  %v2095_v52 = vpack.c.bf16 %v1351_v50, %v1350_v49  ;;  %v1355_v62 = vld [vmem:[#allocation6 + $0x3e8] sm:$0xff]  ;;  %v999_v2 = vld [vmem:[#allocation6 + $0x150] sm:$0xff]  ;;  %vm1644_vm5 = vcmask 97280  }
 0x137   :  { %v734_v9 = vadd.f32 %v724_v31, %v714_v5  ;;  %1939 = vmatpush1.bf16.msra.mxu0 %v1938_v1  ;;  %1949 = vmatpush1.bf16.msra.mxu1 %v1938_v1  ;;  %v756_v14 = vsel %vm740_vm7, %v732_v59, %v748_v8  ;;  %v760_v31 = vld [vmem:[%s2669_s3 + $0x8] sm:$0x3f]  ;;  %v1960_v33 = vpack.c.bf16 %v988_v28, %v987_v27  ;;  %v997_v59 = vld [vmem:[#allocation6 + $0x140] sm:$0xff]  ;;  %v1356_v4 = vld [vmem:[#allocation6 + $0x3f0] sm:$0xff] }
 0x138   :  { %vm741_vm8 = vcmp.ge.f32.partialorder %v733_v7, 0.0  ;;  %v749_v10 = vmul.f32 0.01, %v733_v7  ;;  %v1972_v57 = vpack.c.bf16 %v996_v54, %v995_v53  ;;  %v2098_v58 = vpack.c.bf16 %v1353_v56, %v1352_v55  ;;  %v1357_v5 = vld [vmem:[#allocation6 + $0x3f8] sm:$0xff]  ;;  %v1001_v8 = vld [vmem:[#allocation6 + $0x160] sm:$0xff]  ;;  %v1007_v27 = vld [vmem:[#allocation6 + $0x190] sm:$0xff] }
 0x139   :  { %vm742_vm9 = vcmp.ge.f32.partialorder %v734_v9, 0.0  ;;  %v750_v11 = vmul.f32 0.01, %v734_v9  ;;  %v1975_v63 = vpack.c.bf16 %v998_v60, %v997_v59  ;;  %v2101_v1 = vpack.c.bf16 %v1355_v62, %v1354_v61  ;;  %v1008_v28 = vld [vmem:[#allocation6 + $0x198] sm:$0xff]  ;;  %v953_v59 = vld [vmem:[#allocation6 + $0x8] sm:$0xff]  ;;  %v1313_v60 = vld [vmem:[#allocation6 + $0x2a0] sm:$0xff] }
 0x13a   :  { %v757_v13 = vsel %vm741_vm8, %v733_v7, %v749_v10  ;;  %v1978_v6 = vpack.c.bf16 %v1000_v3, %v999_v2  ;;  %v2104_v7 = vpack.c.bf16 %v1357_v5, %v1356_v4  ;;  %v1358_v10 = vld [vmem:[#allocation6 + $0x400] sm:$0xff]  ;;  %v1990_v30 = vpack.c.bf16 %v1008_v28, %v1007_v27  ;;  %v1369_v42 = vld [vmem:[#allocation6 + $0x458] sm:$0xff] }
 0x13b   :  { %v1943_v15 = vpack.c.bf16 %v757_v13, %v755_v12  ;;  %v758_v16 = vsel %vm742_vm9, %v734_v9, %v750_v11  ;;  %v1002_v9 = vld [vmem:[#allocation6 + $0x168] sm:$0xff]  ;;  %v2122_v44 = vpack.c.bf16 %v1369_v42, %v1368_v41  ;;  %v1320_v27 = vld [vmem:[#allocation6 + $0x2d8] sm:$0xff]  ;;  %v964_v42 = vld [vmem:[#allocation6 + $0x60] sm:$0xff] }
 0x13c   :  { %v1940_v17 = vpack.c.bf16 %v758_v16, %v756_v14  ;;  %v1359_v11 = vld [vmem:[#allocation6 + $0x408] sm:$0xff]  ;;  %v1981_v12 = vpack.c.bf16 %v1002_v9, %v1001_v8  ;;  %v1003_v14 = vld [vmem:[#allocation6 + $0x170] sm:$0xff] }
 0x13d   :  { %v2107_v13 = vpack.c.bf16 %v1359_v11, %v1358_v10  ;;  %v1360_v16 = vld [vmem:[#allocation6 + $0x410] sm:$0xff]  ;;  %v955_v10 = vld [vmem:[#allocation6 + $0x18] sm:$0xff] }
 0x13e   :  { %1942 = vmatprep.subr.msk.bf16.mxu0 %vm1941_vm11, %v1940_v17  ;;  %1952 = vmatprep.subr.msk.bf16.mxu1 %vm1941_vm11, %v1940_v17  ;;  %v2110_v19 = vpack.c.bf16 %v1361_v18, %v1360_v16  ;;  %v954_v8 = vld [vmem:[#allocation6 + $0x10] sm:$0xff]  ;;  %v956_v16 = vld [vmem:[#allocation6 + $0x20] sm:$0xff] }
 0x13f   :  { %1945 = vmatpush1.bf16.msk.msra.mxu0 %vm1941_vm11, %v1943_v15  ;;  %1955 = vmatpush1.bf16.msk.msra.mxu1 %vm1941_vm11, %v1943_v15  ;;  %v1004_v15 = vld [vmem:[#allocation6 + $0x178] sm:$0xff]  ;;  %v1315_v11 = vld [vmem:[#allocation6 + $0x2b0] sm:$0xff]  ;;  %v1317_v18 = vld [vmem:[#allocation6 + $0x2c0] sm:$0xff] }
 0x140   :  { %1956 = vmatprep.subr.bf16.mxu0 %v2355_v24  ;;  %2082 = vmatprep.subr.bf16.mxu1 %v2355_v24  ;;  %v1984_v17 = vpack.c.bf16 %v1004_v15, %v1003_v14  ;;  %v2002_v14 = vpack.c.bf16 %v955_v10, %v954_v8  ;;  %v974_v10 = vld [vmem:[#allocation6 + $0xb0] sm:$0xff] }
 0x142   :  { %1842 = vmatmul.mubr.msk.f32.vlgmr.msra.gmra.mrb[8].mxu0 %vm761_vm12, %v759_v22  ;;  %1848 = vmatmul.mubr.msk.f32.vlgmr.msra.gmra.mrb[8].mxu1 %vm761_vm12, %v1844_v23  ;;  %v1362_v22 = vld [vmem:[#allocation6 + $0x420] sm:$0xff]  ;;  %v1987_v23 = vpack.c.bf16 %v1006_v21, %v1005_v20 }
 0x143   :  { %845 = vmatprep.mubr.f32.mxu0 %v2353_v0  ;;  %931 = vmatprep.mubr.f32.mxu1 %v2353_v0 }
 0x144   :  { %1958 = vmatpush1.bf16.msra.mxu0 %v1957_v25  ;;  %2084 = vmatpush1.bf16.msra.mxu1 %v2083_v26  ;;  %v1363_v25 = vld [vmem:[#allocation6 + $0x428] sm:$0xff] }
 0x145   :  { %1959 = vmatprep.subr.bf16.mxu0 %v2355_v24  ;;  %2085 = vmatprep.subr.bf16.mxu1 %v2355_v24  ;;  %v2113_v26 = vpack.c.bf16 %v1363_v25, %v1362_v22  ;;  %v959_v25 = vld [vmem:[#allocation6 + $0x38] sm:$0xff] }
 0x146   :  { %1843 = vmatmul.mubr.msk.f32.gmra.mrb[10].mxu0 %vm761_vm12, %v760_v31  ;;  %1849 = vmatmul.mubr.msk.f32.gmra.mrb[10].mxu1 %vm761_vm12, %v1845_v32  ;;  %v1365_v31 = vld [vmem:[#allocation6 + $0x438] sm:$0xff] }
 0x147   :  { %v2116_v32 = vpack.c.bf16 %v1365_v31, %v1364_v29  ;;  %v961_v31 = vld [vmem:[#allocation6 + $0x48] sm:$0xff] }
 0x148   :  { %1961 = vmatpush1.bf16.msra.mxu0 %v1960_v33  ;;  %2087 = vmatpush1.bf16.msra.mxu1 %v2086_v34  ;;  %v1009_v33 = vld [vmem:[#allocation6 + $0x1a0] sm:$0xff]  ;;  %v1010_v34 = vld [vmem:[#allocation6 + $0x1a8] sm:$0xff] }
 0x149   :  { %1962 = vmatprep.subr.bf16.mxu0 %v2355_v24  ;;  %2088 = vmatprep.subr.bf16.mxu1 %v2355_v24  ;;  %v1993_v36 = vpack.c.bf16 %v1010_v34, %v1009_v33  ;;  %v1322_v33 = vld [vmem:[#allocation6 + $0x2e8] sm:$0xff] }
 0x14c   :  { %1964 = vmatpush1.bf16.msra.mxu0 %v1963_v39  ;;  %2090 = vmatpush1.bf16.msra.mxu1 %v2089_v40  ;;  %v1012_v39 = vld [vmem:[#allocation6 + $0x1b8] sm:$0xff]  ;;  %v2119_v40 = vpack.c.bf16 %v1367_v37, %v1366_v35 }
 0x14d   :  { %1965 = vmatprep.subr.bf16.mxu0 %v2355_v24  ;;  %2091 = vmatprep.subr.bf16.mxu1 %v2355_v24  ;;  %v1996_v43 = vpack.c.bf16 %v1012_v39, %v1011_v38  ;;  %v963_v37 = vld [vmem:[#allocation6 + $0x58] sm:$0xff]  ;;  %v1323_v38 = vld [vmem:[#allocation6 + $0x2f0] sm:$0xff] }
 0x14e   :  { %v1324_v39 = vld [vmem:[#allocation6 + $0x2f8] sm:$0xff] }
 0x14f   :  { %v2140_v41 = vpack.c.bf16 %v1324_v39, %v1323_v38  ;;  %v1523_v39 = vld [vmem:[#allocation6 + $0x470] sm:$0xff] }
 0x150   :  { %1967 = vmatpush1.bf16.msra.mxu0 %v1966_v45  ;;  %2093 = vmatpush1.bf16.msra.mxu1 %v2092_v46 }
 0x151   :  { %1968 = vmatprep.subr.bf16.mxu0 %v2355_v24  ;;  %2094 = vmatprep.subr.bf16.mxu1 %v2355_v24 }
 0x154   :  { %1970 = vmatpush1.bf16.msra.mxu0 %v1969_v51  ;;  %2096 = vmatpush1.bf16.msra.mxu1 %v2095_v52 }
 0x155   :  { %1971 = vmatprep.subr.bf16.mxu0 %v2355_v24  ;;  %2097 = vmatprep.subr.bf16.mxu1 %v2355_v24 }
 0x158   :  { %1973 = vmatpush1.bf16.msra.mxu0 %v1972_v57  ;;  %2099 = vmatpush1.bf16.msra.mxu1 %v2098_v58  ;;  %v952_v57 = vld [vmem:[#allocation6] sm:$0xff] }
 0x159   :  { %1974 = vmatprep.subr.bf16.mxu0 %v2355_v24  ;;  %2100 = vmatprep.subr.bf16.mxu1 %v2355_v24 }
 0x15c   :  { %1976 = vmatpush1.bf16.msra.mxu0 %v1975_v63  ;;  %2102 = vmatpush1.bf16.msra.mxu1 %v2101_v1  ;;  %v1314_v63 = vld [vmem:[#allocation6 + $0x2a8] sm:$0xff] }
 0x15d   :  { %1977 = vmatprep.subr.bf16.mxu0 %v2355_v24  ;;  %2103 = vmatprep.subr.bf16.mxu1 %v2355_v24 }
 0x160   :  { %1979 = vmatpush1.bf16.msra.mxu0 %v1978_v6  ;;  %2105 = vmatpush1.bf16.msra.mxu1 %v2104_v7  ;;  %v1999_v6 = vpack.c.bf16 %v953_v59, %v952_v57  ;;  %v2125_v7 = vpack.c.bf16 %v1314_v63, %v1313_v60  ;;  %v1329_v57 = vld [vmem:[#allocation6 + $0x320] sm:$0xff]  ;;  %v1331_v63 = vld [vmem:[#allocation6 + $0x330] sm:$0xff] }
 0x161   :  { %1980 = vmatprep.subr.bf16.mxu0 %v2355_v24  ;;  %2106 = vmatprep.subr.bf16.mxu1 %v2355_v24 }
 0x164   :  { %1982 = vmatpush1.bf16.msra.mxu0 %v1981_v12  ;;  %2108 = vmatpush1.bf16.msra.mxu1 %v2107_v13  ;;  %v1316_v12 = vld [vmem:[#allocation6 + $0x2b8] sm:$0xff] }
 0x165   :  { %1983 = vmatprep.subr.bf16.mxu0 %v2355_v24  ;;  %2109 = vmatprep.subr.bf16.mxu1 %v2355_v24  ;;  %v2128_v15 = vpack.c.bf16 %v1316_v12, %v1315_v11  ;;  %v975_v11 = vld [vmem:[#allocation6 + $0xb8] sm:$0xff]  ;;  %v1335_v12 = vld [vmem:[#allocation6 + $0x350] sm:$0xff] }
 0x168   :  { %1985 = vmatpush1.bf16.msra.mxu0 %v1984_v17  ;;  %2111 = vmatpush1.bf16.msra.mxu1 %v2110_v19  ;;  %v957_v17 = vld [vmem:[#allocation6 + $0x28] sm:$0xff] }
 0x169   :  { %1986 = vmatprep.subr.bf16.mxu0 %v2355_v24  ;;  %2112 = vmatprep.subr.bf16.mxu1 %v2355_v24  ;;  %v1318_v19 = vld [vmem:[#allocation6 + $0x2c8] sm:$0xff]  ;;  %v2005_v21 = vpack.c.bf16 %v957_v17, %v956_v16  ;;  %v976_v16 = vld [vmem:[#allocation6 + $0xc0] sm:$0xff] }
 0x16a   :  { %v2131_v22 = vpack.c.bf16 %v1318_v19, %v1317_v18  ;;  %v977_v17 = vld [vmem:[#allocation6 + $0xc8] sm:$0xff]  ;;  %v1337_v18 = vld [vmem:[#allocation6 + $0x360] sm:$0xff] }
 0x16b   :  { %v1338_v19 = vld [vmem:[#allocation6 + $0x368] sm:$0xff] }
 0x16c   :  { %1988 = vmatpush1.bf16.msra.mxu0 %v1987_v23  ;;  %2114 = vmatpush1.bf16.msra.mxu1 %v2113_v26  ;;  %v958_v23 = vld [vmem:[#allocation6 + $0x30] sm:$0xff] }
 0x16d   :  { %1989 = vmatprep.subr.bf16.mxu0 %v2355_v24  ;;  %2115 = vmatprep.subr.bf16.mxu1 %v2355_v24  ;;  %v1319_v26 = vld [vmem:[#allocation6 + $0x2d0] sm:$0xff]  ;;  %v2008_v28 = vpack.c.bf16 %v959_v25, %v958_v23  ;;  %v979_v23 = vld [vmem:[#allocation6 + $0xd8] sm:$0xff] }
 0x16e   :  { %v2134_v29 = vpack.c.bf16 %v1320_v27, %v1319_v26  ;;  %v1339_v25 = vld [vmem:[#allocation6 + $0x370] sm:$0xff]  ;;  %v1340_v26 = vld [vmem:[#allocation6 + $0x378] sm:$0xff] }
 0x170   :  { %1991 = vmatpush1.bf16.msra.mxu0 %v1990_v30  ;;  %2117 = vmatpush1.bf16.msra.mxu1 %v2116_v32  ;;  %v960_v30 = vld [vmem:[#allocation6 + $0x40] sm:$0xff] }
 0x171   :  { %1992 = vmatprep.subr.bf16.mxu0 %v2355_v24  ;;  %2118 = vmatprep.subr.bf16.mxu1 %v2355_v24  ;;  %v1321_v32 = vld [vmem:[#allocation6 + $0x2e0] sm:$0xff]  ;;  %v2011_v34 = vpack.c.bf16 %v961_v31, %v960_v30  ;;  %v1192_v30 = vld [vmem:[#allocation6 + $0x1c8] sm:$0xff] }
 0x172   :  { %v2137_v35 = vpack.c.bf16 %v1322_v33, %v1321_v32  ;;  %v1521_v31 = vld [vmem:[#allocation6 + $0x460] sm:$0xff]  ;;  %v1522_v32 = vld [vmem:[#allocation6 + $0x468] sm:$0xff] }
 0x174   :  { %1994 = vmatpush1.bf16.msra.mxu0 %v1993_v36  ;;  %2120 = vmatpush1.bf16.msra.mxu1 %v2119_v40  ;;  %v962_v36 = vld [vmem:[#allocation6 + $0x50] sm:$0xff] }
 0x175   :  { %1995 = vmatprep.subr.bf16.mxu0 %v2355_v24  ;;  %2121 = vmatprep.subr.bf16.mxu1 %v2355_v24  ;;  %v2014_v40 = vpack.c.bf16 %v963_v37, %v962_v36  ;;  %v1193_v36 = vld [vmem:[#allocation6 + $0x1d0] sm:$0xff]  ;;  %v1194_v37 = vld [vmem:[#allocation6 + $0x1d8] sm:$0xff] }
 0x178   :  { %1997 = vmatpush1.bf16.msra.mxu0 %v1996_v43  ;;  %2123 = vmatpush1.bf16.msra.mxu1 %v2122_v44  ;;  %v965_v43 = vld [vmem:[#allocation6 + $0x68] sm:$0xff]  ;;  %v1325_v44 = vld [vmem:[#allocation6 + $0x300] sm:$0xff] }
 0x179   :  { %1998 = vmatprep.subr.bf16.mxu0 %v2355_v24  ;;  %2124 = vmatprep.subr.bf16.mxu1 %v2355_v24 }
 0x215   :  { %v841_v45 = vpop.f32.mrb[8].mxu0  ;;  %v927_v46 = vpop.f32.mrb[8].mxu1 }
 0x216   :  { %v2561_v47 = vmax.f32 %v841_v45, %v927_v46  ;;  %v843_v48 = vpop.f32.mrb[9].mxu0  ;;  %v929_v49 = vpop.f32.mrb[9].mxu1  ;;  %v1326_v45 = vld [vmem:[#allocation6 + $0x308] sm:$0xff]  ;;  %v2017_v46 = vpack.c.bf16 %v965_v43, %v964_v42  ;;  %v2044_v43 = vpack.c.bf16 %v1194_v37, %v1193_v36  ;;  %v1541_v36 = vld [vmem:[#allocation6 + $0x500] sm:$0xff] }
 0x217   :  { %v939_v50 = vmax.f32 %v843_v48, %v929_v49  ;;  %v2143_v48 = vpack.c.bf16 %v1326_v45, %v1325_v44  ;;  %v966_v49 = vld [vmem:[#allocation6 + $0x70] sm:$0xff]  ;;  %v1542_v37 = vld [vmem:[#allocation6 + $0x508] sm:$0xff] }
 0x218   :  { %942 = vst [vmem:[#allocation2] sm:$0xff] %v2561_v47 }
 0x219   :  { %944 = vst.msk [vmem:[#allocation2 + $0x8] sm:$0xff] %vm943_vm13, %v939_v50  ;;  %v847_v51 = vpop.f32.mrb[10].mxu0  ;;  %v933_v52 = vpop.f32.mrb[10].mxu1  ;;  %v967_v50 = vld [vmem:[#allocation6 + $0x78] sm:$0xff] }
 0x21a   :  { %v940_v53 = vmax.f32 %v847_v51, %v933_v52  ;;  %v849_v54 = vpop.f32.mrb[11].mxu0  ;;  %v935_v55 = vpop.f32.mrb[11].mxu1  ;;  %v1327_v51 = vld [vmem:[#allocation6 + $0x310] sm:$0xff]  ;;  %v1328_v52 = vld [vmem:[#allocation6 + $0x318] sm:$0xff] }
 0x21b   :  { %v941_v56 = vmax.f32 %v849_v54, %v935_v55  ;;  %v2146_v54 = vpack.c.bf16 %v1328_v52, %v1327_v51  ;;  %v968_v55 = vld [vmem:[#allocation6 + $0x80] sm:$0xff] }
 0x21c   :  { %945 = vst [vmem:[#allocation2 + $0x10] sm:$0x3f] %v940_v53  ;;  %v2020_v53 = vpack.c.bf16 %v967_v50, %v966_v49  ;;  %v1526_v50 = vld [vmem:[#allocation6 + $0x488] sm:$0xff] }
 0x21d   :  { %947 = vst.msk [vmem:[#allocation2 + $0x18] sm:$0x3f] %vm946_vm14, %v941_v56  ;;  %v969_v56 = vld [vmem:[#allocation6 + $0x88] sm:$0xff] }
 0x21e   :  { %v2023_v59 = vpack.c.bf16 %v969_v56, %v968_v55  ;;  %v1198_v55 = vld [vmem:[#allocation6 + $0x1f8] sm:$0xff]  ;;  %v1527_v56 = vld [vmem:[#allocation6 + $0x490] sm:$0xff] }
 0x21f   :  { %v980_v61 = vld [vmem:[#allocation2] sm:$0xfe] }
 0x220   :  { %v981_v58 = vld [vmem:[#allocation2 + $0x8] sm:$0xfe]  ;;  %v1018_v5 = vrot.slane %v980_v61, 1  ;;  %v970_v61 = vld [vmem:[#allocation6 + $0x90] sm:$0xff] }
 0x221   :  { %v1021_v3 = vrot.slane %v981_v58, 1  ;;  %v949_v20 = vld [vmem:[#allocation2 + $0x8] sm:$0xff] }
 0x222   :  { %v1330_v58 = vld [vmem:[#allocation6 + $0x328] sm:$0xff] }
 0x223   :  { %v982_v62 = vld [vmem:[#allocation2 + $0x10] sm:$0x1f]  ;;  %v2149_v60 = vpack.c.bf16 %v1330_v58, %v1329_v57  ;;  %v1187_v38 = vld [vmem:[#allocation2 + $0x8] sm:$0xfc]  ;;  %v1528_v57 = vld [vmem:[#allocation6 + $0x498] sm:$0xff] }
 0x224   :  { %v983_v1 = vld [vmem:[#allocation2 + $0x18] sm:$0x1f]  ;;  %v1019_v2 = vrot.slane %v982_v62, 1  ;;  %v1226_v44 = vrot.slane %v1187_v38, 2  ;;  %v950_v49 = vld [vmem:[#allocation2 + $0x10] sm:$0xf] }
 0x225   :  { %v1022_v4 = vrot.slane %v983_v1, 1  ;;  %v971_v62 = vld [vmem:[#allocation6 + $0x98] sm:$0xff] }
 0x226   :  { %v1020_v13 = vsel %vm1017_vm15, %v1018_v5, %v1019_v2  ;;  %v1332_v1 = vld [vmem:[#allocation6 + $0x338] sm:$0xff]  ;;  %v973_v5 = vld [vmem:[#allocation6 + $0xa8] sm:$0xff] }
 0x227   :  { %v1023_v9 = vsel %vm1017_vm15, %v1021_v3, %v1022_v4  ;;  %v2152_v3 = vpack.c.bf16 %v1332_v1, %v1331_v63  ;;  %v1530_v63 = vld [vmem:[#allocation6 + $0x4a8] sm:$0xff] }
 0x228   :  { %1850 = vmatprep.mubr.msk.f32.mxu0 %vm943_vm13, %v1023_v9  ;;  %1856 = vmatprep.mubr.msk.f32.mxu1 %vm943_vm13, %v1023_v9 }
 0x229   :  { %1095 = vmatmul.mubr.f32.vlgmr.msra.gmra.mrb[12].mxu0 %v1020_v13  ;;  %1435 = vmatmul.mubr.f32.vlgmr.msra.gmra.mrb[12].mxu1 %v1020_v13  ;;  %v1336_v13 = vld [vmem:[#allocation6 + $0x358] sm:$0xff] }
 0x22a   :  { %2000 = vmatpush1.bf16.msra.mxu0 %v1999_v6  ;;  %2126 = vmatpush1.bf16.msra.mxu1 %v2125_v7  ;;  %v1333_v6 = vld [vmem:[#allocation6 + $0x340] sm:$0xff]  ;;  %v1334_v7 = vld [vmem:[#allocation6 + $0x348] sm:$0xff] }
 0x22b   :  { %1851 = vmatprep.mubr.msk.f32.mxu0 %vm943_vm13, %v1022_v4  ;;  %1857 = vmatprep.mubr.msk.f32.mxu1 %vm943_vm13, %v1022_v4  ;;  %v972_v4 = vld [vmem:[#allocation6 + $0xa0] sm:$0xff]  ;;  %v2155_v9 = vpack.c.bf16 %v1334_v7, %v1333_v6  ;;  %v1532_v6 = vld [vmem:[#allocation6 + $0x4b8] sm:$0xff] }
 0x22c   :  { %2001 = vmatprep.subr.bf16.mxu0 %v2355_v24  ;;  %2127 = vmatprep.subr.bf16.mxu1 %v2355_v24  ;;  %v2029_v8 = vpack.c.bf16 %v973_v5, %v972_v4  ;;  %v1202_v4 = vld [vmem:[#allocation6 + $0x218] sm:$0xff]  ;;  %v1531_v5 = vld [vmem:[#allocation6 + $0x4b0] sm:$0xff] }
 0x22d   :  { %1100 = vmatmul.mubr.f32.gmra.mrb[14].mxu0 %v1019_v2  ;;  %1440 = vmatmul.mubr.f32.gmra.mrb[14].mxu1 %v1019_v2  ;;  %v2026_v2 = vpack.c.bf16 %v971_v62, %v970_v61  ;;  %v1200_v61 = vld [vmem:[#allocation6 + $0x208] sm:$0xff]  ;;  %v1529_v62 = vld [vmem:[#allocation6 + $0x4a0] sm:$0xff] }
 0x22e   :  { %2003 = vmatpush1.bf16.msra.mxu0 %v2002_v14  ;;  %2129 = vmatpush1.bf16.msra.mxu1 %v2128_v15  ;;  %v2032_v14 = vpack.c.bf16 %v975_v11, %v974_v10  ;;  %v2158_v15 = vpack.c.bf16 %v1336_v13, %v1335_v12  ;;  %v1204_v10 = vld [vmem:[#allocation6 + $0x228] sm:$0xff]  ;;  %v1533_v11 = vld [vmem:[#allocation6 + $0x4c0] sm:$0xff] }
 0x22f   :  { %1852 = vmatprep.mubr.msk.f32.mxu0 %vm943_vm13, %v949_v20  ;;  %1858 = vmatprep.mubr.msk.f32.mxu1 %vm943_vm13, %v949_v20  ;;  %v2035_v20 = vpack.c.bf16 %v977_v17, %v976_v16  ;;  %v1534_v12 = vld [vmem:[#allocation6 + $0x4c8] sm:$0xff]  ;;  %v1206_v16 = vld [vmem:[#allocation6 + $0x238] sm:$0xff]  ;;  %v1535_v17 = vld [vmem:[#allocation6 + $0x4d0] sm:$0xff] }
 0x230   :  { %2004 = vmatprep.subr.bf16.mxu0 %v2355_v24  ;;  %2130 = vmatprep.subr.bf16.mxu1 %v2355_v24 }
 0x232   :  { %2006 = vmatpush1.bf16.msra.mxu0 %v2005_v21  ;;  %2132 = vmatpush1.bf16.msra.mxu1 %v2131_v22  ;;  %v2161_v21 = vpack.c.bf16 %v1338_v19, %v1337_v18  ;;  %v978_v22 = vld [vmem:[#allocation6 + $0xd0] sm:$0xff]  ;;  %v1536_v18 = vld [vmem:[#allocation6 + $0x4d8] sm:$0xff] }
 0x233   :  { %2007 = vmatprep.subr.bf16.mxu0 %v2355_v24  ;;  %2133 = vmatprep.subr.bf16.mxu1 %v2355_v24  ;;  %v2038_v27 = vpack.c.bf16 %v979_v23, %v978_v22  ;;  %v1208_v22 = vld [vmem:[#allocation6 + $0x248] sm:$0xff]  ;;  %v1537_v23 = vld [vmem:[#allocation6 + $0x4e0] sm:$0xff] }
 0x236   :  { %2009 = vmatpush1.bf16.msra.mxu0 %v2008_v28  ;;  %2135 = vmatpush1.bf16.msra.mxu1 %v2134_v29  ;;  %v2164_v28 = vpack.c.bf16 %v1340_v26, %v1339_v25  ;;  %v1191_v29 = vld [vmem:[#allocation6 + $0x1c0] sm:$0xff]  ;;  %v1538_v25 = vld [vmem:[#allocation6 + $0x4e8] sm:$0xff] }
 0x237   :  { %2010 = vmatprep.subr.bf16.mxu0 %v2355_v24  ;;  %2136 = vmatprep.subr.bf16.mxu1 %v2355_v24  ;;  %v2041_v33 = vpack.c.bf16 %v1192_v30, %v1191_v29  ;;  %v1210_v29 = vld [vmem:[#allocation6 + $0x258] sm:$0xff]  ;;  %v1539_v30 = vld [vmem:[#allocation6 + $0x4f0] sm:$0xff] }
 0x23a   :  { %2012 = vmatpush1.bf16.msra.mxu0 %v2011_v34  ;;  %2138 = vmatpush1.bf16.msra.mxu1 %v2137_v35  ;;  %v1189_v34 = vld [vmem:[#allocation2 + $0x18] sm:$0x3f]  ;;  %v2167_v35 = vpack.c.bf16 %v1522_v32, %v1521_v31 }
 0x23b   :  { %2013 = vmatprep.subr.bf16.mxu0 %v2355_v24  ;;  %2139 = vmatprep.subr.bf16.mxu1 %v2355_v24  ;;  %v2601_v42 = vrot.slane %v1189_v34, 2  ;;  %v1540_v31 = vld [vmem:[#allocation6 + $0x4f8] sm:$0xff]  ;;  %v1211_v34 = vld [vmem:[#allocation6 + $0x260] sm:$0xff] }
 0x23d   :  { %v1228_v51 = vsel %vm768_vm6, %v1226_v44, %v2601_v42  ;;  %v1544_v44 = vld [vmem:[#allocation6 + $0x518] sm:$0xff] }
 0x23e   :  { %2015 = vmatpush1.bf16.msra.mxu0 %v2014_v40  ;;  %2141 = vmatpush1.bf16.msra.mxu1 %v2140_v41  ;;  %v1524_v40 = vld [vmem:[#allocation6 + $0x478] sm:$0xff] }
 0x23f   :  { %2016 = vmatprep.subr.bf16.mxu0 %v2355_v24  ;;  %2142 = vmatprep.subr.bf16.mxu1 %v2355_v24  ;;  %v951_v41 = vld [vmem:[#allocation2 + $0x18] sm:$0xf]  ;;  %v2170_v45 = vpack.c.bf16 %v1524_v40, %v1523_v39  ;;  %v2197_v39 = vpack.c.bf16 %v1542_v37, %v1541_v36  ;;  %v1213_v40 = vld [vmem:[#allocation6 + $0x270] sm:$0xff] }
 0x242   :  { %2018 = vmatpush1.bf16.msra.mxu0 %v2017_v46  ;;  %2144 = vmatpush1.bf16.msra.mxu1 %v2143_v48  ;;  %v1195_v46 = vld [vmem:[#allocation6 + $0x1e0] sm:$0xff]  ;;  %v1196_v48 = vld [vmem:[#allocation6 + $0x1e8] sm:$0xff] }
 0x243   :  { %2019 = vmatprep.subr.bf16.mxu0 %v2355_v24  ;;  %2145 = vmatprep.subr.bf16.mxu1 %v2355_v24  ;;  %v2047_v52 = vpack.c.bf16 %v1196_v48, %v1195_v46  ;;  %v1215_v48 = vld [vmem:[#allocation6 + $0x280] sm:$0xff] }
 0x246   :  { %2021 = vmatpush1.bf16.msra.mxu0 %v2020_v53  ;;  %2147 = vmatpush1.bf16.msra.mxu1 %v2146_v54  ;;  %v1197_v54 = vld [vmem:[#allocation6 + $0x1f0] sm:$0xff] }
 0x247   :  { %2022 = vmatprep.subr.bf16.mxu0 %v2355_v24  ;;  %2148 = vmatprep.subr.bf16.mxu1 %v2355_v24  ;;  %v2050_v58 = vpack.c.bf16 %v1198_v55, %v1197_v54  ;;  %v1218_v54 = vld [vmem:[#allocation6 + $0x298] sm:$0xff]  ;;  %v1547_v55 = vld [vmem:[#allocation6 + $0x530] sm:$0xff] }
 0x24a   :  { %2024 = vmatpush1.bf16.msra.mxu0 %v2023_v59  ;;  %2150 = vmatpush1.bf16.msra.mxu1 %v2149_v60  ;;  %v2176_v59 = vpack.c.bf16 %v1528_v57, %v1527_v56  ;;  %v1199_v60 = vld [vmem:[#allocation6 + $0x200] sm:$0xff]  ;;  %v1548_v56 = vld [vmem:[#allocation6 + $0x538] sm:$0xff]  ;;  %v1188_v57 = vld [vmem:[#allocation2 + $0x10] sm:$0x3f] }
 0x24b   :  { %2025 = vmatprep.subr.bf16.mxu0 %v2355_v24  ;;  %2151 = vmatprep.subr.bf16.mxu1 %v2355_v24  ;;  %v2053_v1 = vpack.c.bf16 %v1200_v61, %v1199_v60  ;;  %v1186_v60 = vld [vmem:[#allocation2] sm:$0xfc]  ;;  %v1224_v61 = vrot.slane %v1188_v57, 2 }
 0x24e   :  { %2027 = vmatpush1.bf16.msra.mxu0 %v2026_v2  ;;  %2153 = vmatpush1.bf16.msra.mxu1 %v2152_v3  ;;  %v2179_v2 = vpack.c.bf16 %v1530_v63, %v1529_v62  ;;  %v1201_v3 = vld [vmem:[#allocation6 + $0x210] sm:$0xff]  ;;  %v1223_v62 = vrot.slane %v1186_v60, 2 }
 0x24f   :  { %2028 = vmatprep.subr.bf16.mxu0 %v2355_v24  ;;  %2154 = vmatprep.subr.bf16.mxu1 %v2355_v24  ;;  %v2056_v7 = vpack.c.bf16 %v1202_v4, %v1201_v3 }
 0x250   :  { %v1225_v63 = vsel %vm768_vm6, %v1223_v62, %v1224_v61 }
 0x252   :  { %2030 = vmatpush1.bf16.msra.mxu0 %v2029_v8  ;;  %2156 = vmatpush1.bf16.msra.mxu1 %v2155_v9  ;;  %v2182_v8 = vpack.c.bf16 %v1532_v6, %v1531_v5  ;;  %v1203_v9 = vld [vmem:[#allocation6 + $0x220] sm:$0xff] }
 0x253   :  { %2031 = vmatprep.subr.bf16.mxu0 %v2355_v24  ;;  %2157 = vmatprep.subr.bf16.mxu1 %v2355_v24  ;;  %v2059_v13 = vpack.c.bf16 %v1204_v10, %v1203_v9 }
 0x256   :  { %2033 = vmatpush1.bf16.msra.mxu0 %v2032_v14  ;;  %2159 = vmatpush1.bf16.msra.mxu1 %v2158_v15  ;;  %v2185_v14 = vpack.c.bf16 %v1534_v12, %v1533_v11  ;;  %v1205_v15 = vld [vmem:[#allocation6 + $0x230] sm:$0xff] }
 0x257   :  { %2034 = vmatprep.subr.bf16.mxu0 %v2355_v24  ;;  %2160 = vmatprep.subr.bf16.mxu1 %v2355_v24  ;;  %v2062_v19 = vpack.c.bf16 %v1206_v16, %v1205_v15  ;;  %v1643_v16 = vld [vmem:[%s2672_s6] sm:$0xf] }
 0x25a   :  { %2036 = vmatpush1.bf16.msra.mxu0 %v2035_v20  ;;  %2162 = vmatpush1.bf16.msra.mxu1 %v2161_v21  ;;  %v2188_v20 = vpack.c.bf16 %v1536_v18, %v1535_v17  ;;  %v1207_v21 = vld [vmem:[#allocation6 + $0x240] sm:$0xff] }
 0x25b   :  { %2037 = vmatprep.subr.bf16.mxu0 %v2355_v24  ;;  %2163 = vmatprep.subr.bf16.mxu1 %v2355_v24  ;;  %v2065_v26 = vpack.c.bf16 %v1208_v22, %v1207_v21  ;;  %v1865_v17 = vld [vmem:[%s2672_s6 + $0x4] sm:$0xf] }
 0x25e   :  { %2039 = vmatpush1.bf16.msra.mxu0 %v2038_v27  ;;  %2165 = vmatpush1.bf16.msra.mxu1 %v2164_v28  ;;  %v2191_v27 = vpack.c.bf16 %v1538_v25, %v1537_v23  ;;  %v1209_v28 = vld [vmem:[#allocation6 + $0x250] sm:$0xff] }
 0x25f   :  { %2040 = vmatprep.subr.bf16.mxu0 %v2355_v24  ;;  %2166 = vmatprep.subr.bf16.mxu1 %v2355_v24  ;;  %v2068_v32 = vpack.c.bf16 %v1210_v29, %v1209_v28 }
 0x261   :  { %1176 = vmatmul.mubr.f32.vlgmr.msra.gmra.mrb[12].mxu0 %v2561_v47  ;;  %1510 = vmatmul.mubr.f32.vlgmr.msra.gmra.mrb[12].mxu1 %v2561_v47  ;;  %v1525_v47 = vld [vmem:[#allocation6 + $0x480] sm:$0xff] }
 0x262   :  { %1853 = vmatprep.mubr.msk.f32.mxu0 %vm943_vm13, %v951_v41  ;;  %2042 = vmatpush1.bf16.msra.mxu0 %v2041_v33  ;;  %v2173_v53 = vpack.c.bf16 %v1526_v50, %v1525_v47  ;;  %v2194_v33 = vpack.c.bf16 %v1540_v31, %v1539_v30  ;;  %v1545_v47 = vld [vmem:[#allocation6 + $0x520] sm:$0xff]  ;;  %v1546_v50 = vld [vmem:[#allocation6 + $0x528] sm:$0xff] }
 0x263   :  { %1859 = vmatprep.mubr.msk.f32.mxu1 %vm943_vm13, %v951_v41  ;;  %2168 = vmatpush1.bf16.msra.mxu1 %v2167_v35  ;;  %v1212_v35 = vld [vmem:[#allocation6 + $0x268] sm:$0xff]  ;;  %v1214_v41 = vld [vmem:[#allocation6 + $0x278] sm:$0xff] }
 0x264   :  { %2043 = vmatprep.subr.bf16.mxu0 %v2355_v24  ;;  %2169 = vmatprep.subr.bf16.mxu1 %v2355_v24  ;;  %v2071_v38 = vpack.c.bf16 %v1212_v35, %v1211_v34 }
 0x265   :  { %1181 = vmatmul.mubr.f32.gmra.mrb[14].mxu0 %v950_v49  ;;  %1515 = vmatmul.mubr.f32.gmra.mrb[14].mxu1 %v950_v49  ;;  %v1216_v49 = vld [vmem:[#allocation6 + $0x288] sm:$0xff] }
 0x266   :  { %2045 = vmatpush1.bf16.msra.mxu0 %v2044_v43  ;;  %1854 = vmatprep.mubr.msk.f32.mxu0 %vm943_vm13, %v1228_v51  ;;  %v1543_v43 = vld [vmem:[#allocation6 + $0x510] sm:$0xff] }
 0x267   :  { %2171 = vmatpush1.bf16.msra.mxu1 %v2170_v45  ;;  %1860 = vmatprep.mubr.msk.f32.mxu1 %vm943_vm13, %v1228_v51  ;;  %v2074_v45 = vpack.c.bf16 %v1214_v41, %v1213_v40  ;;  %v2200_v46 = vpack.c.bf16 %v1544_v44, %v1543_v43  ;;  %v2077_v51 = vpack.c.bf16 %v1216_v49, %v1215_v48 }
 0x268   :  { %2046 = vmatprep.subr.bf16.mxu0 %v2355_v24  ;;  %2172 = vmatprep.subr.bf16.mxu1 %v2355_v24 }
 0x26a   :  { %2048 = vmatpush1.bf16.msra.mxu0 %v2047_v52  ;;  %v2203_v52 = vpack.c.bf16 %v1546_v50, %v1545_v47 }
 0x26b   :  { %2174 = vmatpush1.bf16.msra.mxu1 %v2173_v53  ;;  %2049 = vmatprep.subr.bf16.mxu0 %v2355_v24  ;;  %v1217_v53 = vld [vmem:[#allocation6 + $0x290] sm:$0xff] }
 0x26c   :  { %2175 = vmatprep.subr.bf16.mxu1 %v2355_v24 }
 0x26e   :  { %2051 = vmatpush1.bf16.msra.mxu0 %v2050_v58  ;;  %v2080_v58 = vpack.c.bf16 %v1218_v54, %v1217_v53 }
 0x26f   :  { %2177 = vmatpush1.bf16.msra.mxu1 %v2176_v59  ;;  %2052 = vmatprep.subr.bf16.mxu0 %v2355_v24  ;;  %v2206_v59 = vpack.c.bf16 %v1548_v56, %v1547_v55 }
 0x270   :  { %2178 = vmatprep.subr.bf16.mxu1 %v2355_v24 }
 0x272   :  { %2054 = vmatpush1.bf16.msra.mxu0 %v2053_v1 }
 0x273   :  { %2180 = vmatpush1.bf16.msra.mxu1 %v2179_v2  ;;  %2055 = vmatprep.subr.bf16.mxu0 %v2355_v24 }
 0x274   :  { %2181 = vmatprep.subr.bf16.mxu1 %v2355_v24 }
 0x276   :  { %2057 = vmatpush1.bf16.msra.mxu0 %v2056_v7 }
 0x277   :  { %2183 = vmatpush1.bf16.msra.mxu1 %v2182_v8  ;;  %2058 = vmatprep.subr.bf16.mxu0 %v2355_v24 }
 0x278   :  { %2184 = vmatprep.subr.bf16.mxu1 %v2355_v24 }
 0x27a   :  { %2060 = vmatpush1.bf16.msra.mxu0 %v2059_v13 }
 0x27b   :  { %2186 = vmatpush1.bf16.msra.mxu1 %v2185_v14  ;;  %2061 = vmatprep.subr.bf16.mxu0 %v2355_v24 }
 0x27c   :  { %2187 = vmatprep.subr.bf16.mxu1 %v2355_v24 }
 0x27e   :  { %2063 = vmatpush1.bf16.msra.mxu0 %v2062_v19 }
 0x27f   :  { %2189 = vmatpush1.bf16.msra.mxu1 %v2188_v20  ;;  %2064 = vmatprep.subr.bf16.mxu0 %v2355_v24 }
 0x280   :  { %2190 = vmatprep.subr.bf16.mxu1 %v2355_v24 }
 0x282   :  { %2066 = vmatpush1.bf16.msra.mxu0 %v2065_v26 }
 0x283   :  { %2192 = vmatpush1.bf16.msra.mxu1 %v2191_v27  ;;  %2067 = vmatprep.subr.bf16.mxu0 %v2355_v24 }
 0x284   :  { %2193 = vmatprep.subr.bf16.mxu1 %v2355_v24 }
 0x286   :  { %2069 = vmatpush1.bf16.msra.mxu0 %v2068_v32 }
 0x287   :  { %2195 = vmatpush1.bf16.msra.mxu1 %v2194_v33  ;;  %2070 = vmatprep.subr.bf16.mxu0 %v2355_v24 }
 0x288   :  { %2196 = vmatprep.subr.bf16.mxu1 %v2355_v24 }
 0x28a   :  { %2072 = vmatpush1.bf16.msra.mxu0 %v2071_v38 }
 0x28b   :  { %2198 = vmatpush1.bf16.msra.mxu1 %v2197_v39  ;;  %2073 = vmatprep.subr.bf16.mxu0 %v2355_v24 }
 0x28c   :  { %2199 = vmatprep.subr.bf16.mxu1 %v2355_v24 }
 0x28e   :  { %2075 = vmatpush1.bf16.msra.mxu0 %v2074_v45 }
 0x28f   :  { %2201 = vmatpush1.bf16.msra.mxu1 %v2200_v46  ;;  %2076 = vmatprep.subr.bf16.mxu0 %v2355_v24 }
 0x290   :  { %2202 = vmatprep.subr.bf16.mxu1 %v2355_v24 }
 0x292   :  { %2078 = vmatpush1.bf16.msra.mxu0 %v2077_v51 }
 0x293   :  { %2204 = vmatpush1.bf16.msra.mxu1 %v2203_v52  ;;  %2079 = vmatprep.subr.bf16.mxu0 %v2355_v24 }
 0x294   :  { %2205 = vmatprep.subr.bf16.mxu1 %v2355_v24 }
 0x296   :  { %2081 = vmatpush1.bf16.msra.mxu0 %v2080_v58 }
 0x297   :  { %2207 = vmatpush1.bf16.msra.mxu1 %v2206_v59  ;;  %2208 = vmatprep.subr.bf16.mxu0 %v2355_v24 }
 0x298   :  { %2212 = vmatprep.subr.bf16.mxu1 %v2355_v24  ;;  %v1862_v24 = vld [vmem:[%s2671_s5] ss:$0 sm:$0xff] }
 0x299   :  { %1300 = vmatmul.mubr.f32.vlgmr.msra.gmra.mrb[12].mxu0 %v1225_v63 }
 0x29a   :  { %1614 = vmatmul.mubr.f32.vlgmr.msra.gmra.mrb[12].mxu1 %v1225_v63  ;;  %1855 = vmatprep.mubr.msk.f32.mxu0 %vm943_vm13, %v2601_v42 }
 0x29b   :  { %1861 = vmatprep.mubr.msk.f32.mxu1 %vm943_vm13, %v2601_v42 }
 0x29d   :  { %1305 = vmatmul.mubr.f32.gmra.mrb[14].mxu0 %v1224_v61 }
 0x29e   :  { %1619 = vmatmul.mubr.f32.gmra.mrb[14].mxu1 %v1224_v61  ;;  %1878 = vmatprep.mubr.msk.f32.mxu0 %vm2356_vm0, %v2353_v0 }
 0x29f   :  { %1885 = vmatprep.mubr.msk.f32.mxu1 %vm2356_vm0, %v2353_v0 }
 0x36c   :  { %v1301_v1 = vpop.f32.mrb[12].mxu0 }
 0x36d   :  { %v1615_v2 = vpop.f32.mrb[12].mxu1  ;;  %v1303_v3 = vpop.f32.mrb[13].mxu0 }
 0x36e   :  { %v1626_v4 = vmax.f32 %v1301_v1, %v1615_v2  ;;  %v1617_v5 = vpop.f32.mrb[13].mxu1 }
 0x370   :  { %v1635_v6 = vadd.f32 %v1862_v24, %v1626_v4  ;;  %v1306_v7 = vpop.f32.mrb[14].mxu0 }
 0x371   :  { %v1620_v8 = vpop.f32.mrb[14].mxu1  ;;  %v1308_v42 = vpop.f32.mrb[15].mxu0 }
 0x372   :  { %v1627_v9 = vmax.f32 %v1306_v7, %v1620_v8  ;;  %v1622_v10 = vpop.f32.mrb[15].mxu1  ;;  %v1639_v11 = vmul.f32 0.01, %v1635_v6  ;;  %vm1637_vm2 = vcmp.ge.f32.partialorder %v1635_v6, 0.0 }
 0x374   :  { %v1636_v12 = vadd.f32 %v1862_v24, %v1627_v9  ;;  %v1641_v13 = vsel %vm1637_vm2, %v1635_v6, %v1639_v11 }
 0x376   :  { %vm1638_vm3 = vcmp.ge.f32.partialorder %v1636_v12, 0.0  ;;  %v1640_v0 = vmul.f32 0.01, %v1636_v12 }
 0x378   :  { %v1642_v14 = vsel %vm1638_vm3, %v1636_v12, %v1640_v0 }
 0x379   :  { %v2209_v15 = vpack.c.bf16 %v1642_v14, %v1641_v13 }
 0x37b   :  { %2211 = vmatpush3.bf16.msk.msra.mxu0 %vm2210_vm4, %v2209_v15  ;;  %2215 = vmatpush3.bf16.msk.msra.mxu1 %vm2210_vm4, %v2209_v15 }
 0x37e   :  { %1879 = vmatmul.mubr.msk.f32.vlgmr.msra.gmra.mrb[16].mxu0 %vm1644_vm5, %v1643_v16  ;;  %1886 = vmatmul.mubr.msk.f32.vlgmr.msra.gmra.mrb[16].mxu1 %vm1644_vm5, %v1865_v17 }
 0x451   :  { %v1718_v18 = vpop.f32.mrb[16].mxu0  ;;  %v1793_v19 = vpop.f32.mrb[16].mxu1 }
 0x452   :  { %v1797_v20 = vmax.f32 %v1718_v18, %v1793_v19  ;;  %v1880_v21 = vpop.f32.mrb[17].mxu0  ;;  %v1887_v22 = vpop.f32.mrb[17].mxu1 }
 0x454   :  { %v1798_v23 = vpack.c.bf16 %v1797_v20, %v1797_v20 }
 0x456   :  { %1799 = vst [vmem:[#allocation8] sm:$0x3] %v1798_v23 }
 0x457   :  { %2330 = shalt.err (!%p2327_p6)
}
 0x458   :  { %s2331_s19 = scalar_lea.hbm %s2673_s7, 32 }
 0x459   :  { %p2332_p7 = scmp.ne.s32.totalorder %s2673_s7, %s2331_s19  ;;  %p2335_p8 = scmp.lt.u32.totalorder %s2331_s19, %s2673_s7 }
 0x45b   :  { %p2337_p9 = pnand %p2335_p8, %p2332_p7 }
 0x45d   :  { %2340 = shalt.err (!%p2337_p9)
}
 0x45e   :  { %1809 = dma.vmem_to_hbm [thread:$0]  %s1807_s16, 32, %s2673_s7, [#allocation5]  }
 0x45f   :  { %2345 = dma.done.wait [#allocation5], 32  }
 0x460   :  { %2346 = vsyncadd [#allocation5], 4294967264 }
 0x461   :  { %1813 = vsyncpa [#allocation4], 1 }
 0x462   :  { %1814 = vsyncpa [#allocation7], 1 }
 0x463   :  { %1815 = vsyncpa [#allocation5], 1 }

</bundles_post_ra>
